<compile_context>
chip_gen: v6e
topology: v6e:2x2x1
jax: 0.10.0
libtpu: 0.0.40
codegen_flags: <defaults>
</compile_context>

<pallas_src>
import math

import jax
import jax.numpy as jnp
from jax import lax
from jax.experimental import pallas as pl
from jax.experimental.pallas import tpu as pltpu


# ---------------------------------------------------------------------------
# helpers
# ---------------------------------------------------------------------------
def _round_up(x, m):
    return ((x + m - 1) // m) * m


def _softmax_rows(logits):
    # exact (non-approx) normalisation: result feeds log() / the KLD weighting.
    m = jnp.max(logits, axis=-1, keepdims=True)
    e = jnp.exp(logits - m)
    return e / jnp.sum(e, axis=-1, keepdims=True)


def _argmax_rows_f32(x):
    # first-occurrence argmax along the lane axis, returned as float32 (rows, 1)
    t = x.shape[-1]
    mx = jnp.max(x, axis=-1, keepdims=True)
    idx = lax.broadcasted_iota(jnp.int32, x.shape, 1)
    cand = jnp.where(x >= mx, idx, t)
    return jnp.min(cand, axis=-1, keepdims=True).astype(jnp.float32)


# ---------------------------------------------------------------------------
# fused kernel
# ---------------------------------------------------------------------------
def fused_forward_kernel(bow_ref, state_ref, eps_ref,
                         ew1, eb1, ew2, eb2, wmulv, bmulv,
                         wdze, db, gw1, gb1, gw2, gb2,
                         cw1, cb1, cw2, cb2, emb_ref, embT_ref,
                         slab_ref, bowout_ref, mask_ref):
    f32 = jnp.float32
    tb = bow_ref.shape[0]
    V = bow_ref.shape[1]
    nz = eps_ref.shape[1]
    T = emb_ref.shape[0]

    bow = bow_ref[...]
    mask_ref[...] = (bow > 0).astype(f32)                          # bow_mask

    # --- encode(): tanh MLP -> (mu | logvar) fused -> z = mu + eps*exp(.5 lv) ---
    h = jnp.tanh(jnp.dot(bow, ew1[...], preferred_element_type=f32) + eb1[...])
    h = jnp.tanh(jnp.dot(h, ew2[...], preferred_element_type=f32) + eb2[...])
    mulv = jnp.dot(h, wmulv[...], preferred_element_type=f32) + bmulv[...]
    mu = mulv[:, :nz]
    logvar = mulv[:, nz:]
    z = mu + eps_ref[...] * jnp.exp(0.5 * logvar)

    emb = emb_ref[...]                                              # (T, nz)
    embT = embT_ref[...]                                            # (nz, T)

    # --- GetUser.forward(z)  (one_user=False => g_p_user == p_user) ---
    hg = jnp.tanh(jnp.dot(z, gw1[...], preferred_element_type=f32) + gb1[...])
    g_logits = jnp.dot(hg, gw2[...], preferred_element_type=f32) + gb2[...]
    p_user = _softmax_rows(g_logits)
    h_user = jnp.dot(p_user, emb, preferred_element_type=f32)       # (tb, nz)
    sel = _argmax_rows_f32(g_logits)                                # argmax on logits

    # --- GetUser.content_to_user(state[0][-1])  (con_one_user=False) ---
    hc = jnp.tanh(jnp.dot(state_ref[...], cw1[...], preferred_element_type=f32) + cb1[...])
    c_logits = jnp.dot(hc, cw2[...], preferred_element_type=f32) + cb2[...]
    con_p_user = _softmax_rows(c_logits)
    content_h_user = jnp.dot(con_p_user, emb, preferred_element_type=f32)
    con_sel = _argmax_rows_f32(c_logits)

    # --- decoder bow logits and kld's zE term from ONE matmul: z @ [dec_w | E^T] ---
    zlin = jnp.dot(z, wdze[...], preferred_element_type=f32)        # (tb, V + Tpad)
    dec_logits = -(zlin[:, :V] + db[...])
    bowout_ref[...] = jnp.log(_softmax_rows(dec_logits) + 1e-4)     # bow_outputs
    zE = zlin[:, V:V + T]                                           # (tb, T)

    # --- kld per row:
    #   sum_t p[b,t] * sum_d -0.5*(lv[b,d] - (z[b,d]-E[t,d])^2)
    # = sum_t p[b,t] * -0.5*(lv_sum[b] - ||z_b||^2 + 2 zE[b,t] - ||E_t||^2)
    lv_sum = jnp.sum(logvar, axis=-1, keepdims=True)                # (tb, 1)
    z_sq = jnp.sum(z * z, axis=-1, keepdims=True)                   # (tb, 1)
    e_sq_row = jnp.sum(embT * embT, axis=0, keepdims=True)          # (1, T)
    kld_row = -0.5 * (lv_sum - z_sq + 2.0 * zE - e_sq_row)          # (tb, T)
    kld_col = jnp.sum(p_user * kld_row, axis=1, keepdims=True)      # (tb, 1) per-example

    # --- orthogonality regularizer + mean embedding norm (emb-only, tiny) ---
    g = jnp.dot(emb, embT, preferred_element_type=f32)              # (T, T) = E E^T
    r = lax.broadcasted_iota(jnp.int32, (T, T), 0)
    c = lax.broadcasted_iota(jnp.int32, (T, T), 1)
    off = g * (r != c).astype(f32)                                  # == (G - I) * (1 - I)
    reg_val = jnp.sqrt(jnp.sum(jnp.sum(off * off, axis=1, keepdims=True),
                               axis=0, keepdims=True))              # (1, 1)
    user_norm = jnp.sum(jnp.sqrt(e_sq_row), axis=1, keepdims=True) * (1.0 / T)  # (1, 1)

    # --- single concatenated, lane-dense slab store ---
    used = 3 * nz + 2 * T + 5
    pad = slab_ref.shape[1] - used
    pieces = [
        z, p_user, h_user, con_p_user, content_h_user,
        sel, con_sel, kld_col,
        jnp.broadcast_to(reg_val, (tb, 1)),
        jnp.broadcast_to(user_norm, (tb, 1)),
    ]
    if pad > 0:
        pieces.append(jnp.zeros((tb, pad), f32))
    slab_ref[...] = jnp.concatenate(pieces, axis=-1)


# ---------------------------------------------------------------------------
# parameters (deterministic in-script init, mimicking nn.Linear / nn.Embedding)
# ---------------------------------------------------------------------------
def linear_params(key, fan_in, fan_out):
    kw, kb = jax.random.split(key)
    bound = 1.0 / math.sqrt(fan_in)
    w = jax.random.uniform(kw, (fan_in, fan_out), jnp.float32, -bound, bound)
    b = jax.random.uniform(kb, (1, fan_out), jnp.float32, -bound, bound)
    return w, b


def init_params(key, cfg):
    V, H, nz, T = cfg["vocab_size"], cfg["decoder_hidden_size"], cfg["n_z"], cfg["n_topic_num"]
    keys = jax.random.split(key, 10)
    p = {}
    p["enc_w1"], p["enc_b1"] = linear_params(keys[0], V, 2 * H)        # enc_linear1
    p["enc_w2"], p["enc_b2"] = linear_params(keys[1], 2 * H, H)        # enc_linear2
    p["mu_w"], p["mu_b"] = linear_params(keys[2], H, nz)               # hidden_to_mu
    p["lv_w"], p["lv_b"] = linear_params(keys[3], H, nz)               # hidden_to_logvar
    p["dec_w"], p["dec_b"] = linear_params(keys[4], nz, V)             # dec_linear1
    p["gu_w1"], p["gu_b1"] = linear_params(keys[5], nz, nz // 2)       # GetUser.linear1
    p["gu_w2"], p["gu_b2"] = linear_params(keys[6], nz // 2, T)        # GetUser.linear2
    p["cu_w1"], p["cu_b1"] = linear_params(keys[7], H, H // 2)         # content_linear1
    p["cu_w2"], p["cu_b2"] = linear_params(keys[8], H // 2, T)         # content_linear2
    p["use_emb"] = jax.random.normal(keys[9], (T, nz), jnp.float32)    # GetUser.use_emb
    return p


# ---------------------------------------------------------------------------
# forward pass of user2seq_test_new (training branch, is_test=False)
# ---------------------------------------------------------------------------
def forward(params, tgt_bow, enc_state_top, eps, cfg):
    B, V = tgt_bow.shape
    H, nz, T = cfg["decoder_hidden_size"], cfg["n_z"], cfg["n_topic_num"]
    f32 = jnp.float32

    Tpad = _round_up(T, 128)                       # lane-pad E^T riding on dec matmul
    slab_w = max(128, _round_up(3 * nz + 2 * T + 5, 128))
    tile_b = min(B, 128)
    nb = pl.cdiv(B, tile_b)

    # --- one-time weight prep (fuse mu|logvar, fuse dec_w | E^T) ---
    w_mulv = jnp.concatenate([params["mu_w"], params["lv_w"]], axis=1)     # (H, 2nz)
    b_mulv = jnp.concatenate([params["mu_b"], params["lv_b"]], axis=1)     # (1, 2nz)
    emb = params["use_emb"]                                                # (T, nz)
    emb_T = emb.T                                                          # (nz, T)
    emb_T_pad = jnp.pad(emb_T, ((0, 0), (0, Tpad - T)))
    w_dec_ze = jnp.concatenate([params["dec_w"], emb_T_pad], axis=1)       # (nz, V+Tpad)

    batch_inputs = [tgt_bow, enc_state_top, eps]
    weight_inputs = [
        params["enc_w1"], params["enc_b1"], params["enc_w2"], params["enc_b2"],
        w_mulv, b_mulv, w_dec_ze, params["dec_b"],
        params["gu_w1"], params["gu_b1"], params["gu_w2"], params["gu_b2"],
        params["cu_w1"], params["cu_b1"], params["cu_w2"], params["cu_b2"],
        emb, emb_T,
    ]

    def batch_spec(shape):
        return pl.BlockSpec((tile_b,) + tuple(shape[1:]), lambda i: (i, 0))

    def weight_spec(shape):
        return pl.BlockSpec(tuple(shape), lambda i: (0, 0))

    in_specs = ([batch_spec(x.shape) for x in batch_inputs]
                + [weight_spec(x.shape) for x in weight_inputs])

    out_shapes = (
        jax.ShapeDtypeStruct((B, slab_w), f32),    # packed slab
        jax.ShapeDtypeStruct((B, V), f32),         # bow_outputs
        jax.ShapeDtypeStruct((B, V), f32),         # bow_mask
    )
    out_specs = tuple(batch_spec(s.shape) for s in out_shapes)

    # advisory cost estimate so XLA schedules surrounding work around this call
    mm_flops = (2 * B * (V * 2 * H + 2 * H * H + H * 2 * nz + nz * (V + Tpad)
                         + nz * (nz // 2) + (nz // 2) * T
                         + H * (H // 2) + (H // 2) * T + 2 * T * nz)
                + 2 * T * T * nz)
    transc = B * (3 * H + (nz // 2) + (H // 2) + nz + 2 * V + 2 * T) + 2 * T
    bytes_acc = 4 * (sum(int(x.size) for x in batch_inputs + weight_inputs)
                     + sum(int(math.prod(s.shape)) for s in out_shapes))
    cost = pl.CostEstimate(flops=mm_flops, transcendentals=transc,
                           bytes_accessed=bytes_acc)

    slab, bow_outputs, bow_mask = pl.pallas_call(
        fused_forward_kernel,
        grid=(nb,),
        in_specs=in_specs,
        out_specs=out_specs,
        out_shape=out_shapes,
        compiler_params=pltpu.CompilerParams(dimension_semantics=("parallel",)),
        cost_estimate=cost,
    )(*batch_inputs, *weight_inputs)

    # --- unpack the slab (cheap static slices, fused by XLA under jit) ---
    z = slab[:, 0:nz]
    p_user = slab[:, nz:nz + T]
    h_user = slab[:, nz + T:2 * nz + T]
    con_p_user = slab[:, 2 * nz + T:2 * nz + 2 * T]
    content_h_user = slab[:, 2 * nz + 2 * T:3 * nz + 2 * T]
    c0 = 3 * nz + 2 * T
    selected_user = slab[:, c0].astype(jnp.int32)
    con_selected_user = slab[:, c0 + 1].astype(jnp.int32)
    kld = jnp.mean(slab[:, c0 + 2])                # mean over batch of per-row kld
    reg = slab[0, c0 + 3]
    user_norm = slab[0, c0 + 4]

    user = h_user if cfg["use_post_user"] else content_h_user  # fed to decoder (external)

    return {
        "bow_outputs": bow_outputs,
        "kld": kld,
        "mask": bow_mask,
        "reg": reg,
        "user_norm": user_norm,
        "selected_user": selected_user,
        "p_user": p_user,
        "con_sel_user": con_selected_user,
        "con_p_user": con_p_user,
        "h_user": h_user,
        "content_h_user": content_h_user,
        "user": user,
        "z": z,
    }


# ---------------------------------------------------------------------------
if __name__ == "__main__":
    cfg = dict(vocab_size=256, decoder_hidden_size=64, n_z=32, n_topic_num=16,
               one_user=False, con_one_user=False, use_post_user=True, tau=1.0)
    B = 8

    key = jax.random.PRNGKey(0)
    k_par, k_bow, k_state, k_eps = jax.random.split(key, 4)

    params = init_params(k_par, cfg)

    # batch.tgt_bow: integer bag-of-words counts, cast to float in the module
    tgt_bow = jax.random.randint(k_bow, (B, cfg["vocab_size"]), 0, 3).astype(jnp.float32)
    # stand-in for encoder final hidden state  state[0][-1]  (RNN encoder is external)
    enc_state_top = jax.random.normal(k_state, (B, cfg["decoder_hidden_size"]), jnp.float32)
    # reparameterization noise  torch.randn([B, n_z])
    eps = jax.random.normal(k_eps, (B, cfg["n_z"]), jnp.float32)

    fwd = jax.jit(lambda p, b, s, e: forward(p, b, s, e, cfg))
    out = fwd(params, tgt_bow, enc_state_top, eps)
    jax.block_until_ready(out)
    print("KERNEL_OK")
</pallas_src>

<mosaic_0001>
module attributes {stable_mosaic.version = 11 : i64} {
  func.func @fused_forward_kernel(%arg0: i32, %arg1: memref<8x256xf32, #tpu.memory_space<vmem>>, %arg2: memref<8x64xf32, #tpu.memory_space<vmem>>, %arg3: memref<8x32xf32, #tpu.memory_space<vmem>>, %arg4: memref<256x128xf32, #tpu.memory_space<vmem>>, %arg5: memref<1x128xf32, #tpu.memory_space<vmem>>, %arg6: memref<128x64xf32, #tpu.memory_space<vmem>>, %arg7: memref<1x64xf32, #tpu.memory_space<vmem>>, %arg8: memref<64x64xf32, #tpu.memory_space<vmem>>, %arg9: memref<1x64xf32, #tpu.memory_space<vmem>>, %arg10: memref<32x384xf32, #tpu.memory_space<vmem>>, %arg11: memref<1x256xf32, #tpu.memory_space<vmem>>, %arg12: memref<32x16xf32, #tpu.memory_space<vmem>>, %arg13: memref<1x16xf32, #tpu.memory_space<vmem>>, %arg14: memref<16x16xf32, #tpu.memory_space<vmem>>, %arg15: memref<1x16xf32, #tpu.memory_space<vmem>>, %arg16: memref<64x32xf32, #tpu.memory_space<vmem>>, %arg17: memref<1x32xf32, #tpu.memory_space<vmem>>, %arg18: memref<32x16xf32, #tpu.memory_space<vmem>>, %arg19: memref<1x16xf32, #tpu.memory_space<vmem>>, %arg20: memref<16x32xf32, #tpu.memory_space<vmem>>, %arg21: memref<32x16xf32, #tpu.memory_space<vmem>>, %arg22: memref<8x256xf32, #tpu.memory_space<vmem>>, %arg23: memref<8x256xf32, #tpu.memory_space<vmem>>, %arg24: memref<8x256xf32, #tpu.memory_space<vmem>>) attributes {dimension_semantics = [#tpu.dimension_semantics<parallel>], iteration_bounds = array<i64: 1>, scalar_prefetch = 0 : i64, scratch_operands = 0 : i64, tpu.core_type = #tpu.core_type<tc>, window_params = [{transform_indices = @transform_0, window_bounds = array<i64: 8, 256>}, {transform_indices = @transform_1, window_bounds = array<i64: 8, 64>}, {transform_indices = @transform_2, window_bounds = array<i64: 8, 32>}, {pipeline_mode = #tpu.pipeline_mode<synchronous>, transform_indices = @transform_3, window_bounds = array<i64: 256, 128>}, {pipeline_mode = #tpu.pipeline_mode<synchronous>, transform_indices = @transform_4, window_bounds = array<i64: 1, 128>}, {pipeline_mode = #tpu.pipeline_mode<synchronous>, transform_indices = @transform_5, window_bounds = array<i64: 128, 64>}, {pipeline_mode = #tpu.pipeline_mode<synchronous>, transform_indices = @transform_6, window_bounds = array<i64: 1, 64>}, {pipeline_mode = #tpu.pipeline_mode<synchronous>, transform_indices = @transform_7, window_bounds = array<i64: 64, 64>}, {pipeline_mode = #tpu.pipeline_mode<synchronous>, transform_indices = @transform_8, window_bounds = array<i64: 1, 64>}, {pipeline_mode = #tpu.pipeline_mode<synchronous>, transform_indices = @transform_9, window_bounds = array<i64: 32, 384>}, {pipeline_mode = #tpu.pipeline_mode<synchronous>, transform_indices = @transform_10, window_bounds = array<i64: 1, 256>}, {pipeline_mode = #tpu.pipeline_mode<synchronous>, transform_indices = @transform_11, window_bounds = array<i64: 32, 16>}, {pipeline_mode = #tpu.pipeline_mode<synchronous>, transform_indices = @transform_12, window_bounds = array<i64: 1, 16>}, {pipeline_mode = #tpu.pipeline_mode<synchronous>, transform_indices = @transform_13, window_bounds = array<i64: 16, 16>}, {pipeline_mode = #tpu.pipeline_mode<synchronous>, transform_indices = @transform_14, window_bounds = array<i64: 1, 16>}, {pipeline_mode = #tpu.pipeline_mode<synchronous>, transform_indices = @transform_15, window_bounds = array<i64: 64, 32>}, {pipeline_mode = #tpu.pipeline_mode<synchronous>, transform_indices = @transform_16, window_bounds = array<i64: 1, 32>}, {pipeline_mode = #tpu.pipeline_mode<synchronous>, transform_indices = @transform_17, window_bounds = array<i64: 32, 16>}, {pipeline_mode = #tpu.pipeline_mode<synchronous>, transform_indices = @transform_18, window_bounds = array<i64: 1, 16>}, {pipeline_mode = #tpu.pipeline_mode<synchronous>, transform_indices = @transform_19, window_bounds = array<i64: 16, 32>}, {pipeline_mode = #tpu.pipeline_mode<synchronous>, transform_indices = @transform_20, window_bounds = array<i64: 32, 16>}, {transform_indices = @transform_21, window_bounds = array<i64: 8, 256>}, {transform_indices = @transform_22, window_bounds = array<i64: 8, 256>}, {transform_indices = @transform_23, window_bounds = array<i64: 8, 256>}]} {
    %c0 = arith.constant 0 : index
    %c0_0 = arith.constant 0 : index
    %0 = vector.load %arg1[%c0, %c0_0] : memref<8x256xf32, #tpu.memory_space<vmem>>, vector<8x256xf32>
    %cst = arith.constant 0.000000e+00 : f32
    %1 = vector.broadcast %cst : f32 to vector<8x256xf32>
    %2 = arith.cmpf ogt, %0, %1 : vector<8x256xf32>
    %3 = arith.extui %2 : vector<8x256xi1> to vector<8x256xi32>
    %4 = arith.sitofp %3 : vector<8x256xi32> to vector<8x256xf32>
    %c0_1 = arith.constant 0 : index
    %c0_2 = arith.constant 0 : index
    %5 = vector.load %arg24[%c0_1, %c0_2] : memref<8x256xf32, #tpu.memory_space<vmem>>, vector<8x256xf32>
    tpu.vector_store %arg24[%c0_1, %c0_2], %4 {strides = array<i32>} : memref<8x256xf32, #tpu.memory_space<vmem>>, vector<8x256xf32>,
    %c0_3 = arith.constant 0 : index
    %c0_4 = arith.constant 0 : index
    %6 = vector.load %arg4[%c0_3, %c0_4] : memref<256x128xf32, #tpu.memory_space<vmem>>, vector<256x128xf32>
    %cst_5 = arith.constant dense<0.000000e+00> : vector<8x128xf32>
    %7 = tpu.matmul %0, %6, %cst_5 {dimension_numbers = #tpu.dot_dimension_numbers<[1], [0], [0], [1], [0, 0, 1, 1], [], []>} : vector<8x256xf32>, vector<256x128xf32>, vector<8x128xf32> -> vector<8x128xf32>
    %c0_6 = arith.constant 0 : index
    %c0_7 = arith.constant 0 : index
    %8 = vector.load %arg5[%c0_6, %c0_7] : memref<1x128xf32, #tpu.memory_space<vmem>>, vector<1x128xf32>
    %9 = vector.broadcast %8 : vector<1x128xf32> to vector<8x128xf32>
    %10 = arith.addf %7, %9 : vector<8x128xf32>
    %11 = math.tanh %10 : vector<8x128xf32>
    %c0_8 = arith.constant 0 : index
    %c0_9 = arith.constant 0 : index
    %12 = vector.load %arg6[%c0_8, %c0_9] : memref<128x64xf32, #tpu.memory_space<vmem>>, vector<128x64xf32>
    %cst_10 = arith.constant dense<0.000000e+00> : vector<8x64xf32>
    %13 = tpu.matmul %11, %12, %cst_10 {dimension_numbers = #tpu.dot_dimension_numbers<[1], [0], [0], [1], [0, 0, 1, 1], [], []>} : vector<8x128xf32>, vector<128x64xf32>, vector<8x64xf32> -> vector<8x64xf32>
    %c0_11 = arith.constant 0 : index
    %c0_12 = arith.constant 0 : index
    %14 = vector.load %arg7[%c0_11, %c0_12] : memref<1x64xf32, #tpu.memory_space<vmem>>, vector<1x64xf32>
    %15 = vector.broadcast %14 : vector<1x64xf32> to vector<8x64xf32>
    %16 = arith.addf %13, %15 : vector<8x64xf32>
    %17 = math.tanh %16 : vector<8x64xf32>
    %c0_13 = arith.constant 0 : index
    %c0_14 = arith.constant 0 : index
    %18 = vector.load %arg8[%c0_13, %c0_14] : memref<64x64xf32, #tpu.memory_space<vmem>>, vector<64x64xf32>
    %cst_15 = arith.constant dense<0.000000e+00> : vector<8x64xf32>
    %19 = tpu.matmul %17, %18, %cst_15 {dimension_numbers = #tpu.dot_dimension_numbers<[1], [0], [0], [1], [0, 0, 1, 1], [], []>} : vector<8x64xf32>, vector<64x64xf32>, vector<8x64xf32> -> vector<8x64xf32>
    %c0_16 = arith.constant 0 : index
    %c0_17 = arith.constant 0 : index
    %20 = vector.load %arg9[%c0_16, %c0_17] : memref<1x64xf32, #tpu.memory_space<vmem>>, vector<1x64xf32>
    %21 = vector.broadcast %20 : vector<1x64xf32> to vector<8x64xf32>
    %22 = arith.addf %19, %21 : vector<8x64xf32>
    %23 = vector.extract_strided_slice %22 {offsets = [0, 0], sizes = [8, 32], strides = [1, 1]} : vector<8x64xf32> to vector<8x32xf32>
    %24 = vector.extract_strided_slice %22 {offsets = [0, 32], sizes = [8, 32], strides = [1, 1]} : vector<8x64xf32> to vector<8x32xf32>
    %c0_18 = arith.constant 0 : index
    %c0_19 = arith.constant 0 : index
    %25 = vector.load %arg3[%c0_18, %c0_19] : memref<8x32xf32, #tpu.memory_space<vmem>>, vector<8x32xf32>
    %cst_20 = arith.constant 5.000000e-01 : f32
    %26 = vector.broadcast %cst_20 : f32 to vector<8x32xf32>
    %27 = arith.mulf %26, %24 : vector<8x32xf32>
    %28 = math.exp %27 : vector<8x32xf32>
    %29 = arith.mulf %25, %28 : vector<8x32xf32>
    %30 = arith.addf %23, %29 : vector<8x32xf32>
    %c0_21 = arith.constant 0 : index
    %c0_22 = arith.constant 0 : index
    %31 = vector.load %arg20[%c0_21, %c0_22] : memref<16x32xf32, #tpu.memory_space<vmem>>, vector<16x32xf32>
    %c0_23 = arith.constant 0 : index
    %c0_24 = arith.constant 0 : index
    %32 = vector.load %arg21[%c0_23, %c0_24] : memref<32x16xf32, #tpu.memory_space<vmem>>, vector<32x16xf32>
    %c0_25 = arith.constant 0 : index
    %c0_26 = arith.constant 0 : index
    %33 = vector.load %arg12[%c0_25, %c0_26] : memref<32x16xf32, #tpu.memory_space<vmem>>, vector<32x16xf32>
    %cst_27 = arith.constant dense<0.000000e+00> : vector<8x16xf32>
    %34 = tpu.matmul %30, %33, %cst_27 {dimension_numbers = #tpu.dot_dimension_numbers<[1], [0], [0], [1], [0, 0, 1, 1], [], []>} : vector<8x32xf32>, vector<32x16xf32>, vector<8x16xf32> -> vector<8x16xf32>
    %c0_28 = arith.constant 0 : index
    %c0_29 = arith.constant 0 : index
    %35 = vector.load %arg13[%c0_28, %c0_29] : memref<1x16xf32, #tpu.memory_space<vmem>>, vector<1x16xf32>
    %36 = vector.broadcast %35 : vector<1x16xf32> to vector<8x16xf32>
    %37 = arith.addf %34, %36 : vector<8x16xf32>
    %38 = math.tanh %37 : vector<8x16xf32>
    %c0_30 = arith.constant 0 : index
    %c0_31 = arith.constant 0 : index
    %39 = vector.load %arg14[%c0_30, %c0_31] : memref<16x16xf32, #tpu.memory_space<vmem>>, vector<16x16xf32>
    %cst_32 = arith.constant dense<0.000000e+00> : vector<8x16xf32>
    %40 = tpu.matmul %38, %39, %cst_32 {dimension_numbers = #tpu.dot_dimension_numbers<[1], [0], [0], [1], [0, 0, 1, 1], [], []>} : vector<8x16xf32>, vector<16x16xf32>, vector<8x16xf32> -> vector<8x16xf32>
    %c0_33 = arith.constant 0 : index
    %c0_34 = arith.constant 0 : index
    %41 = vector.load %arg15[%c0_33, %c0_34] : memref<1x16xf32, #tpu.memory_space<vmem>>, vector<1x16xf32>
    %42 = vector.broadcast %41 : vector<1x16xf32> to vector<8x16xf32>
    %43 = arith.addf %40, %42 : vector<8x16xf32>
    %cst_35 = arith.constant dense<0xFF800000> : vector<8xf32>
    %44 = vector.multi_reduction <maximumf>, %43, %cst_35 [1] : vector<8x16xf32> to vector<8xf32>
    %45 = vector.shape_cast %44 : vector<8xf32> to vector<8x1xf32>
    %46 = vector.broadcast %45 : vector<8x1xf32> to vector<8x16xf32>
    %47 = arith.subf %43, %46 : vector<8x16xf32>
    %48 = math.exp %47 : vector<8x16xf32>
    %cst_36 = arith.constant dense<0.000000e+00> : vector<8xf32>
    %49 = vector.multi_reduction <add>, %48, %cst_36 [1] : vector<8x16xf32> to vector<8xf32>
    %50 = vector.shape_cast %49 : vector<8xf32> to vector<8x1xf32>
    %51 = vector.broadcast %50 : vector<8x1xf32> to vector<8x16xf32>
    %52 = arith.divf %48, %51 : vector<8x16xf32>
    %cst_37 = arith.constant dense<0.000000e+00> : vector<8x32xf32>
    %53 = tpu.matmul %52, %31, %cst_37 {dimension_numbers = #tpu.dot_dimension_numbers<[1], [0], [0], [1], [0, 0, 1, 1], [], []>} : vector<8x16xf32>, vector<16x32xf32>, vector<8x32xf32> -> vector<8x32xf32>
    %cst_38 = arith.constant dense<0xFF800000> : vector<8xf32>
    %54 = vector.multi_reduction <maximumf>, %43, %cst_38 [1] : vector<8x16xf32> to vector<8xf32>
    %55 = vector.shape_cast %54 : vector<8xf32> to vector<8x1xf32>
    %56 = tpu.iota {dimensions = array<i32: 1>} : vector<8x16xi32>
    %57 = vector.broadcast %55 : vector<8x1xf32> to vector<8x16xf32>
    %58 = arith.cmpf oge, %43, %57 : vector<8x16xf32>
    %c16_i32 = arith.constant 16 : i32
    %59 = vector.broadcast %c16_i32 : i32 to vector<8x16xi32>
    %60 = arith.select %58, %56, %59 : vector<8x16xi1>, vector<8x16xi32>
    %cst_39 = arith.constant dense<2147483647> : vector<8xi32>
    %61 = vector.multi_reduction <minsi>, %60, %cst_39 [1] : vector<8x16xi32> to vector<8xi32>
    %62 = vector.shape_cast %61 : vector<8xi32> to vector<8x1xi32>
    %63 = arith.sitofp %62 : vector<8x1xi32> to vector<8x1xf32>
    %c0_40 = arith.constant 0 : index
    %c0_41 = arith.constant 0 : index
    %64 = vector.load %arg2[%c0_40, %c0_41] : memref<8x64xf32, #tpu.memory_space<vmem>>, vector<8x64xf32>
    %c0_42 = arith.constant 0 : index
    %c0_43 = arith.constant 0 : index
    %65 = vector.load %arg16[%c0_42, %c0_43] : memref<64x32xf32, #tpu.memory_space<vmem>>, vector<64x32xf32>
    %cst_44 = arith.constant dense<0.000000e+00> : vector<8x32xf32>
    %66 = tpu.matmul %64, %65, %cst_44 {dimension_numbers = #tpu.dot_dimension_numbers<[1], [0], [0], [1], [0, 0, 1, 1], [], []>} : vector<8x64xf32>, vector<64x32xf32>, vector<8x32xf32> -> vector<8x32xf32>
    %c0_45 = arith.constant 0 : index
    %c0_46 = arith.constant 0 : index
    %67 = vector.load %arg17[%c0_45, %c0_46] : memref<1x32xf32, #tpu.memory_space<vmem>>, vector<1x32xf32>
    %68 = vector.broadcast %67 : vector<1x32xf32> to vector<8x32xf32>
    %69 = arith.addf %66, %68 : vector<8x32xf32>
    %70 = math.tanh %69 : vector<8x32xf32>
    %c0_47 = arith.constant 0 : index
    %c0_48 = arith.constant 0 : index
    %71 = vector.load %arg18[%c0_47, %c0_48] : memref<32x16xf32, #tpu.memory_space<vmem>>, vector<32x16xf32>
    %cst_49 = arith.constant dense<0.000000e+00> : vector<8x16xf32>
    %72 = tpu.matmul %70, %71, %cst_49 {dimension_numbers = #tpu.dot_dimension_numbers<[1], [0], [0], [1], [0, 0, 1, 1], [], []>} : vector<8x32xf32>, vector<32x16xf32>, vector<8x16xf32> -> vector<8x16xf32>
    %c0_50 = arith.constant 0 : index
    %c0_51 = arith.constant 0 : index
    %73 = vector.load %arg19[%c0_50, %c0_51] : memref<1x16xf32, #tpu.memory_space<vmem>>, vector<1x16xf32>
    %74 = vector.broadcast %73 : vector<1x16xf32> to vector<8x16xf32>
    %75 = arith.addf %72, %74 : vector<8x16xf32>
    %cst_52 = arith.constant dense<0xFF800000> : vector<8xf32>
    %76 = vector.multi_reduction <maximumf>, %75, %cst_52 [1] : vector<8x16xf32> to vector<8xf32>
    %77 = vector.shape_cast %76 : vector<8xf32> to vector<8x1xf32>
    %78 = vector.broadcast %77 : vector<8x1xf32> to vector<8x16xf32>
    %79 = arith.subf %75, %78 : vector<8x16xf32>
    %80 = math.exp %79 : vector<8x16xf32>
    %cst_53 = arith.constant dense<0.000000e+00> : vector<8xf32>
    %81 = vector.multi_reduction <add>, %80, %cst_53 [1] : vector<8x16xf32> to vector<8xf32>
    %82 = vector.shape_cast %81 : vector<8xf32> to vector<8x1xf32>
    %83 = vector.broadcast %82 : vector<8x1xf32> to vector<8x16xf32>
    %84 = arith.divf %80, %83 : vector<8x16xf32>
    %cst_54 = arith.constant dense<0.000000e+00> : vector<8x32xf32>
    %85 = tpu.matmul %84, %31, %cst_54 {dimension_numbers = #tpu.dot_dimension_numbers<[1], [0], [0], [1], [0, 0, 1, 1], [], []>} : vector<8x16xf32>, vector<16x32xf32>, vector<8x32xf32> -> vector<8x32xf32>
    %cst_55 = arith.constant dense<0xFF800000> : vector<8xf32>
    %86 = vector.multi_reduction <maximumf>, %75, %cst_55 [1] : vector<8x16xf32> to vector<8xf32>
    %87 = vector.shape_cast %86 : vector<8xf32> to vector<8x1xf32>
    %88 = tpu.iota {dimensions = array<i32: 1>} : vector<8x16xi32>
    %89 = vector.broadcast %87 : vector<8x1xf32> to vector<8x16xf32>
    %90 = arith.cmpf oge, %75, %89 : vector<8x16xf32>
    %c16_i32_56 = arith.constant 16 : i32
    %91 = vector.broadcast %c16_i32_56 : i32 to vector<8x16xi32>
    %92 = arith.select %90, %88, %91 : vector<8x16xi1>, vector<8x16xi32>
    %cst_57 = arith.constant dense<2147483647> : vector<8xi32>
    %93 = vector.multi_reduction <minsi>, %92, %cst_57 [1] : vector<8x16xi32> to vector<8xi32>
    %94 = vector.shape_cast %93 : vector<8xi32> to vector<8x1xi32>
    %95 = arith.sitofp %94 : vector<8x1xi32> to vector<8x1xf32>
    %c0_58 = arith.constant 0 : index
    %c0_59 = arith.constant 0 : index
    %96 = vector.load %arg10[%c0_58, %c0_59] : memref<32x384xf32, #tpu.memory_space<vmem>>, vector<32x384xf32>
    %cst_60 = arith.constant dense<0.000000e+00> : vector<8x384xf32>
    %97 = tpu.matmul %30, %96, %cst_60 {dimension_numbers = #tpu.dot_dimension_numbers<[1], [0], [0], [1], [0, 0, 1, 1], [], []>} : vector<8x32xf32>, vector<32x384xf32>, vector<8x384xf32> -> vector<8x384xf32>
    %98 = vector.extract_strided_slice %97 {offsets = [0, 0], sizes = [8, 256], strides = [1, 1]} : vector<8x384xf32> to vector<8x256xf32>
    %c0_61 = arith.constant 0 : index
    %c0_62 = arith.constant 0 : index
    %99 = vector.load %arg11[%c0_61, %c0_62] : memref<1x256xf32, #tpu.memory_space<vmem>>, vector<1x256xf32>
    %100 = vector.broadcast %99 : vector<1x256xf32> to vector<8x256xf32>
    %101 = arith.addf %98, %100 : vector<8x256xf32>
    %cst_63 = arith.constant 0.000000e+00 : f32
    %102 = vector.broadcast %cst_63 : f32 to vector<8x256xf32>
    %103 = arith.subf %102, %101 : vector<8x256xf32>
    %cst_64 = arith.constant dense<0xFF800000> : vector<8xf32>
    %104 = vector.multi_reduction <maximumf>, %103, %cst_64 [1] : vector<8x256xf32> to vector<8xf32>
    %105 = vector.shape_cast %104 : vector<8xf32> to vector<8x1xf32>
    %106 = vector.broadcast %105 : vector<8x1xf32> to vector<8x256xf32>
    %107 = arith.subf %103, %106 : vector<8x256xf32>
    %108 = math.exp %107 : vector<8x256xf32>
    %cst_65 = arith.constant dense<0.000000e+00> : vector<8xf32>
    %109 = vector.multi_reduction <add>, %108, %cst_65 [1] : vector<8x256xf32> to vector<8xf32>
    %110 = vector.shape_cast %109 : vector<8xf32> to vector<8x1xf32>
    %111 = vector.broadcast %110 : vector<8x1xf32> to vector<8x256xf32>
    %112 = arith.divf %108, %111 : vector<8x256xf32>
    %cst_66 = arith.constant 9.99999974E-5 : f32
    %113 = vector.broadcast %cst_66 : f32 to vector<8x256xf32>
    %114 = arith.addf %112, %113 : vector<8x256xf32>
    %115 = math.log %114 : vector<8x256xf32>
    %c0_67 = arith.constant 0 : index
    %c0_68 = arith.constant 0 : index
    %116 = vector.load %arg23[%c0_67, %c0_68] : memref<8x256xf32, #tpu.memory_space<vmem>>, vector<8x256xf32>
    tpu.vector_store %arg23[%c0_67, %c0_68], %115 {strides = array<i32>} : memref<8x256xf32, #tpu.memory_space<vmem>>, vector<8x256xf32>,
    %117 = vector.extract_strided_slice %97 {offsets = [0, 256], sizes = [8, 16], strides = [1, 1]} : vector<8x384xf32> to vector<8x16xf32>
    %cst_69 = arith.constant dense<0.000000e+00> : vector<8xf32>
    %118 = vector.multi_reduction <add>, %24, %cst_69 [1] : vector<8x32xf32> to vector<8xf32>
    %119 = vector.shape_cast %118 : vector<8xf32> to vector<8x1xf32>
    %120 = arith.mulf %30, %30 : vector<8x32xf32>
    %cst_70 = arith.constant dense<0.000000e+00> : vector<8xf32>
    %121 = vector.multi_reduction <add>, %120, %cst_70 [1] : vector<8x32xf32> to vector<8xf32>
    %122 = vector.shape_cast %121 : vector<8xf32> to vector<8x1xf32>
    %123 = arith.mulf %32, %32 : vector<32x16xf32>
    %cst_71 = arith.constant dense<0.000000e+00> : vector<16xf32>
    %124 = vector.multi_reduction <add>, %123, %cst_71 [0] : vector<32x16xf32> to vector<16xf32>
    %125 = vector.shape_cast %124 : vector<16xf32> to vector<1x16xf32>
    %126 = arith.subf %119, %122 : vector<8x1xf32>
    %cst_72 = arith.constant 2.000000e+00 : f32
    %127 = vector.broadcast %cst_72 : f32 to vector<8x16xf32>
    %128 = arith.mulf %127, %117 : vector<8x16xf32>
    %129 = vector.broadcast %126 : vector<8x1xf32> to vector<8x16xf32>
    %130 = arith.addf %129, %128 : vector<8x16xf32>
    %131 = vector.broadcast %125 : vector<1x16xf32> to vector<8x16xf32>
    %132 = arith.subf %130, %131 : vector<8x16xf32>
    %cst_73 = arith.constant -5.000000e-01 : f32
    %133 = vector.broadcast %cst_73 : f32 to vector<8x16xf32>
    %134 = arith.mulf %133, %132 : vector<8x16xf32>
    %135 = arith.mulf %52, %134 : vector<8x16xf32>
    %cst_74 = arith.constant dense<0.000000e+00> : vector<8xf32>
    %136 = vector.multi_reduction <add>, %135, %cst_74 [1] : vector<8x16xf32> to vector<8xf32>
    %137 = vector.shape_cast %136 : vector<8xf32> to vector<8x1xf32>
    %cst_75 = arith.constant dense<0.000000e+00> : vector<16x16xf32>
    %138 = tpu.matmul %31, %32, %cst_75 {dimension_numbers = #tpu.dot_dimension_numbers<[1], [0], [0], [1], [0, 0, 1, 1], [], []>} : vector<16x32xf32>, vector<32x16xf32>, vector<16x16xf32> -> vector<16x16xf32>
    %139 = tpu.iota {dimensions = array<i32: 0>} : vector<16x16xi32>
    %140 = tpu.iota {dimensions = array<i32: 1>} : vector<16x16xi32>
    %141 = arith.cmpi ne, %139, %140 : vector<16x16xi32>
    %142 = arith.extui %141 : vector<16x16xi1> to vector<16x16xi32>
    %143 = arith.sitofp %142 : vector<16x16xi32> to vector<16x16xf32>
    %144 = arith.mulf %138, %143 : vector<16x16xf32>
    %145 = arith.mulf %144, %144 : vector<16x16xf32>
    %cst_76 = arith.constant dense<0.000000e+00> : vector<16xf32>
    %146 = vector.multi_reduction <add>, %145, %cst_76 [1] : vector<16x16xf32> to vector<16xf32>
    %147 = vector.shape_cast %146 : vector<16xf32> to vector<16x1xf32>
    %cst_77 = arith.constant dense<0.000000e+00> : vector<1xf32>
    %148 = vector.multi_reduction <add>, %147, %cst_77 [0] : vector<16x1xf32> to vector<1xf32>
    %149 = vector.shape_cast %148 : vector<1xf32> to vector<1x1xf32>
    %150 = math.sqrt %149 : vector<1x1xf32>
    %151 = math.sqrt %125 : vector<1x16xf32>
    %cst_78 = arith.constant dense<0.000000e+00> : vector<1xf32>
    %152 = vector.multi_reduction <add>, %151, %cst_78 [1] : vector<1x16xf32> to vector<1xf32>
    %153 = vector.shape_cast %152 : vector<1xf32> to vector<1x1xf32>
    %cst_79 = arith.constant 6.250000e-02 : f32
    %154 = vector.broadcast %cst_79 : f32 to vector<1x1xf32>
    %155 = arith.mulf %153, %154 : vector<1x1xf32>
    %156 = vector.shape_cast %150 : vector<1x1xf32> to vector<1x1xf32>
    %157 = vector.broadcast %156 : vector<1x1xf32> to vector<8x1xf32>
    %158 = vector.shape_cast %155 : vector<1x1xf32> to vector<1x1xf32>
    %159 = vector.broadcast %158 : vector<1x1xf32> to vector<8x1xf32>
    %cst_80 = arith.constant 0.000000e+00 : f32
    %160 = vector.broadcast %cst_80 : f32 to vector<8x123xf32>
    %161 = tpu.concatenate %30, %52, %53, %84, %85, %63, %95, %137, %157, %159, %160 in 1 : vector<8x32xf32>, vector<8x16xf32>, vector<8x32xf32>, vector<8x16xf32>, vector<8x32xf32>, vector<8x1xf32>, vector<8x1xf32>, vector<8x1xf32>, vector<8x1xf32>, vector<8x1xf32>, vector<8x123xf32> -> vector<8x256xf32>
    %c0_81 = arith.constant 0 : index
    %c0_82 = arith.constant 0 : index
    %162 = vector.load %arg22[%c0_81, %c0_82] : memref<8x256xf32, #tpu.memory_space<vmem>>, vector<8x256xf32>
    tpu.vector_store %arg22[%c0_81, %c0_82], %161 {strides = array<i32>} : memref<8x256xf32, #tpu.memory_space<vmem>>, vector<8x256xf32>,
    return
  }
  func.func @transform_0(%arg0: i32) -> (i32, i32) {
    %c0_i32 = arith.constant 0 : i32
    %c0_i32_0 = arith.constant 0 : i32
    return %arg0, %c0_i32 : i32, i32
  }
  func.func @transform_1(%arg0: i32) -> (i32, i32) {
    %c0_i32 = arith.constant 0 : i32
    %c0_i32_0 = arith.constant 0 : i32
    return %arg0, %c0_i32 : i32, i32
  }
  func.func @transform_2(%arg0: i32) -> (i32, i32) {
    %c0_i32 = arith.constant 0 : i32
    %c0_i32_0 = arith.constant 0 : i32
    return %arg0, %c0_i32 : i32, i32
  }
  func.func @transform_3(%arg0: i32) -> (i32, i32) {
    %c0_i32 = arith.constant 0 : i32
    %c0_i32_0 = arith.constant 0 : i32
    %c0_i32_1 = arith.constant 0 : i32
    return %c0_i32, %c0_i32_0 : i32, i32
  }
  func.func @transform_4(%arg0: i32) -> (i32, i32) {
    %c0_i32 = arith.constant 0 : i32
    %c0_i32_0 = arith.constant 0 : i32
    %c0_i32_1 = arith.constant 0 : i32
    return %c0_i32, %c0_i32_0 : i32, i32
  }
  func.func @transform_5(%arg0: i32) -> (i32, i32) {
    %c0_i32 = arith.constant 0 : i32
    %c0_i32_0 = arith.constant 0 : i32
    %c0_i32_1 = arith.constant 0 : i32
    return %c0_i32, %c0_i32_0 : i32, i32
  }
  func.func @transform_6(%arg0: i32) -> (i32, i32) {
    %c0_i32 = arith.constant 0 : i32
    %c0_i32_0 = arith.constant 0 : i32
    %c0_i32_1 = arith.constant 0 : i32
    return %c0_i32, %c0_i32_0 : i32, i32
  }
  func.func @transform_7(%arg0: i32) -> (i32, i32) {
    %c0_i32 = arith.constant 0 : i32
    %c0_i32_0 = arith.constant 0 : i32
    %c0_i32_1 = arith.constant 0 : i32
    return %c0_i32, %c0_i32_0 : i32, i32
  }
  func.func @transform_8(%arg0: i32) -> (i32, i32) {
    %c0_i32 = arith.constant 0 : i32
    %c0_i32_0 = arith.constant 0 : i32
    %c0_i32_1 = arith.constant 0 : i32
    return %c0_i32, %c0_i32_0 : i32, i32
  }
  func.func @transform_9(%arg0: i32) -> (i32, i32) {
    %c0_i32 = arith.constant 0 : i32
    %c0_i32_0 = arith.constant 0 : i32
    %c0_i32_1 = arith.constant 0 : i32
    return %c0_i32, %c0_i32_0 : i32, i32
  }
  func.func @transform_10(%arg0: i32) -> (i32, i32) {
    %c0_i32 = arith.constant 0 : i32
    %c0_i32_0 = arith.constant 0 : i32
    %c0_i32_1 = arith.constant 0 : i32
    return %c0_i32, %c0_i32_0 : i32, i32
  }
  func.func @transform_11(%arg0: i32) -> (i32, i32) {
    %c0_i32 = arith.constant 0 : i32
    %c0_i32_0 = arith.constant 0 : i32
    %c0_i32_1 = arith.constant 0 : i32
    return %c0_i32, %c0_i32_0 : i32, i32
  }
  func.func @transform_12(%arg0: i32) -> (i32, i32) {
    %c0_i32 = arith.constant 0 : i32
    %c0_i32_0 = arith.constant 0 : i32
    %c0_i32_1 = arith.constant 0 : i32
    return %c0_i32, %c0_i32_0 : i32, i32
  }
  func.func @transform_13(%arg0: i32) -> (i32, i32) {
    %c0_i32 = arith.constant 0 : i32
    %c0_i32_0 = arith.constant 0 : i32
    %c0_i32_1 = arith.constant 0 : i32
    return %c0_i32, %c0_i32_0 : i32, i32
  }
  func.func @transform_14(%arg0: i32) -> (i32, i32) {
    %c0_i32 = arith.constant 0 : i32
    %c0_i32_0 = arith.constant 0 : i32
    %c0_i32_1 = arith.constant 0 : i32
    return %c0_i32, %c0_i32_0 : i32, i32
  }
  func.func @transform_15(%arg0: i32) -> (i32, i32) {
    %c0_i32 = arith.constant 0 : i32
    %c0_i32_0 = arith.constant 0 : i32
    %c0_i32_1 = arith.constant 0 : i32
    return %c0_i32, %c0_i32_0 : i32, i32
  }
  func.func @transform_16(%arg0: i32) -> (i32, i32) {
    %c0_i32 = arith.constant 0 : i32
    %c0_i32_0 = arith.constant 0 : i32
    %c0_i32_1 = arith.constant 0 : i32
    return %c0_i32, %c0_i32_0 : i32, i32
  }
  func.func @transform_17(%arg0: i32) -> (i32, i32) {
    %c0_i32 = arith.constant 0 : i32
    %c0_i32_0 = arith.constant 0 : i32
    %c0_i32_1 = arith.constant 0 : i32
    return %c0_i32, %c0_i32_0 : i32, i32
  }
  func.func @transform_18(%arg0: i32) -> (i32, i32) {
    %c0_i32 = arith.constant 0 : i32
    %c0_i32_0 = arith.constant 0 : i32
    %c0_i32_1 = arith.constant 0 : i32
    return %c0_i32, %c0_i32_0 : i32, i32
  }
  func.func @transform_19(%arg0: i32) -> (i32, i32) {
    %c0_i32 = arith.constant 0 : i32
    %c0_i32_0 = arith.constant 0 : i32
    %c0_i32_1 = arith.constant 0 : i32
    return %c0_i32, %c0_i32_0 : i32, i32
  }
  func.func @transform_20(%arg0: i32) -> (i32, i32) {
    %c0_i32 = arith.constant 0 : i32
    %c0_i32_0 = arith.constant 0 : i32
    %c0_i32_1 = arith.constant 0 : i32
    return %c0_i32, %c0_i32_0 : i32, i32
  }
  func.func @transform_21(%arg0: i32) -> (i32, i32) {
    %c0_i32 = arith.constant 0 : i32
    %c0_i32_0 = arith.constant 0 : i32
    return %arg0, %c0_i32 : i32, i32
  }
  func.func @transform_22(%arg0: i32) -> (i32, i32) {
    %c0_i32 = arith.constant 0 : i32
    %c0_i32_0 = arith.constant 0 : i32
    return %arg0, %c0_i32 : i32, i32
  }
  func.func @transform_23(%arg0: i32) -> (i32, i32) {
    %c0_i32 = arith.constant 0 : i32
    %c0_i32_0 = arith.constant 0 : i32
    return %arg0, %c0_i32 : i32, i32
  }
}

</mosaic_0001>

<bundles_post_ra>
// kernel: _lambda_.1
= control target key start
LH: loop header
LB: loop body
LE: loop exit
PB: predicated region body
PF: predicated region fallthrough
CT: control target
= control target key end

     0   :  { %s2353_s0 = inlined_call_operand.vmem [shape: f32[8,256], index: 0, kind: input, shape index: {}]   ;;  %s2354_s1 = inlined_call_operand.vmem [shape: f32[8,64], index: 1, kind: input, shape index: {}]   ;;  %s2355_s2 = inlined_call_operand.vmem [shape: f32[8,32], index: 2, kind: input, shape index: {}]   ;;  %s2356_s3 = inlined_call_operand.vmem [shape: f32[256,128], index: 3, kind: input, shape index: {}]   ;;  %s2357_s4 = inlined_call_operand.vmem [shape: f32[1,128], index: 4, kind: input, shape index: {}]   ;;  %s2358_s5 = inlined_call_operand.vmem [shape: f32[128,64], index: 5, kind: input, shape index: {}]   ;;  %s2359_s6 = inlined_call_operand.vmem [shape: f32[1,64], index: 6, kind: input, shape index: {}]   ;;  %s2360_s7 = inlined_call_operand.vmem [shape: f32[64,64], index: 7, kind: input, shape index: {}]   ;;  %s2361_s8 = inlined_call_operand.vmem [shape: f32[1,64], index: 8, kind: input, shape index: {}]   ;;  %s2362_s9 = inlined_call_operand.vmem [shape: f32[32,384], index: 9, kind: input, shape index: {}]   ;;  %s2363_s10 = inlined_call_operand.vmem [shape: f32[1,256], index: 10, kind: input, shape index: {}]   ;;  %s2364_s11 = inlined_call_operand.vmem [shape: f32[32,16], index: 11, kind: input, shape index: {}]   ;;  %s2365_s12 = inlined_call_operand.vmem [shape: f32[1,16], index: 12, kind: input, shape index: {}]   ;;  %s2366_s13 = inlined_call_operand.vmem [shape: f32[16,16], index: 13, kind: input, shape index: {}]   ;;  %s2367_s14 = inlined_call_operand.vmem [shape: f32[1,16], index: 14, kind: input, shape index: {}]   ;;  %s2368_s15 = inlined_call_operand.vmem [shape: f32[64,32], index: 15, kind: input, shape index: {}]   ;;  %s2369_s16 = inlined_call_operand.vmem [shape: f32[1,32], index: 16, kind: input, shape index: {}]   ;;  %s2370_s17 = inlined_call_operand.vmem [shape: f32[32,16], index: 17, kind: input, shape index: {}]   ;;  %s2371_s18 = inlined_call_operand.vmem [shape: f32[1,16], index: 18, kind: input, shape index: {}]   ;;  %s2372_s19 = inlined_call_operand.vmem [shape: f32[16,32], index: 19, kind: input, shape index: {}]   ;;  %s2373_s20 = inlined_call_operand.vmem [shape: f32[32,16], index: 20, kind: input, shape index: {}]   ;;  %s2374_s21 = inlined_call_operand.vmem [shape: f32[8,256], index: 21, kind: output, shape index: {0}]   ;;  %s2375_s22 = inlined_call_operand.hbm [shape: f32[8,256], index: 22, kind: output, shape index: {1}]   ;;  %s2376_s23 = inlined_call_operand.hbm [shape: f32[8,256], index: 23, kind: output, shape index: {2}]  }
   0x1   :  { %2381 = sst [smem:[#allocation8_spill]] %s2353_s0 }
   0x2   :  { %2382 = sst [smem:[#allocation9_spill]] %s2354_s1 }
   0x3   :  { %2383 = sst [smem:[#allocation10_spill]] %s2355_s2 }
   0x4   :  { %2384 = sst [smem:[#allocation11_spill]] %s2356_s3 }
   0x5   :  { %2385 = sst [smem:[#allocation12_spill]] %s2357_s4 }
   0x6   :  { %2386 = sst [smem:[#allocation13_spill]] %s2358_s5 }
   0x7   :  { %2387 = sst [smem:[#allocation14_spill]] %s2359_s6 }
   0x8   :  { %2388 = sst [smem:[#allocation15_spill]] %s2360_s7 }
   0x9   :  { %29 = vsyncpa [#allocation3], 0  ;;  %s2389_s24 = sld [smem:[#allocation11_spill]]  ;;  %v1704_v4 = vmov 0.0  }
   0xa   :  { %1482 = vmatprep.subr.mxu1 %v1704_v4  ;;  %s2390_s4 = sld [smem:[#allocation8_spill]] }
   0xb   :  { %s2391_s26 = sld [smem:[#allocation13_spill]] }
   0xf   :  { %v114_v0 = vld [vmem:[%s2389_s24 + $0xf8] sm:$0xff]  ;;  %v113_v2 = vld [vmem:[%s2389_s24 + $0xf0] sm:$0xff]  ;;  %v112_v5 = vld [vmem:[%s2389_s24 + $0xe8] sm:$0xff] }
  0x10   :  { %v98_v1 = vld [vmem:[%s2389_s24 + $0x78] sm:$0xff]  ;;  %1382 = vmatprep.subr.mxu0 %v114_v0  ;;  %v97_v3 = vld [vmem:[%s2389_s24 + $0x70] sm:$0xff]  ;;  %v96_v6 = vld [vmem:[%s2389_s24 + $0x68] sm:$0xff] }
  0x11   :  { %1383 = vmatpush3.msra.mxu0 %v98_v1  ;;  %v111_v7 = vld [vmem:[%s2389_s24 + $0xe0] sm:$0xff]  ;;  %v110_v9 = vld [vmem:[%s2389_s24 + $0xd8] sm:$0xff]  ;;  %v109_v11 = vld [vmem:[%s2389_s24 + $0xd0] sm:$0xff] }
  0x12   :  { %1384 = vmatprep.subr.mxu0 %v113_v2  ;;  %v95_v8 = vld [vmem:[%s2389_s24 + $0x60] sm:$0xff]  ;;  %v94_v10 = vld [vmem:[%s2389_s24 + $0x58] sm:$0xff]  ;;  %v93_v12 = vld [vmem:[%s2389_s24 + $0x50] sm:$0xff] }
  0x13   :  { %1385 = vmatpush3.msra.mxu0 %v97_v3  ;;  %v108_v13 = vld [vmem:[%s2389_s24 + $0xc8] sm:$0xff]  ;;  %v208_v16 = vld [vmem:[%s2391_s26 + $0x78] sm:$0xff]  ;;  %v207_v17 = vld [vmem:[%s2391_s26 + $0x70] sm:$0xff] }
  0x14   :  { %1386 = vmatprep.subr.mxu0 %v112_v5  ;;  %v74_v14 = vld [vmem:[%s2390_s4 + $0x8] sm:$0xff]  ;;  %v107_v18 = vld [vmem:[%s2389_s24 + $0xc0] sm:$0xff]  ;;  %1483 = vmatpush3.msra.mxu1 %v208_v16 }
  0x15   :  { %1387 = vmatpush3.msra.mxu0 %v96_v6  ;;  %v92_v15 = vld [vmem:[%s2389_s24 + $0x48] sm:$0xff]  ;;  %vm76_vm0 = vcmp.gt.f32.partialorder %v74_v14, 0.0  ;;  %186 = vmatprep.mubr.f32.mxu0 %v74_v14  ;;  %v91_v20 = vld [vmem:[%s2389_s24 + $0x40] sm:$0xff] }
  0x16   :  { %1388 = vmatprep.subr.mxu0 %v111_v7  ;;  %v1361_v19 = vsel %vm76_vm0, 1.0, %v1704_v4  ;;  %1484 = vmatprep.subr.mxu1 %v1704_v4  ;;  %v206_v21 = vld [vmem:[%s2391_s26 + $0x68] sm:$0xff] }
  0x17   :  { %1389 = vmatpush3.msra.mxu0 %v95_v8  ;;  %82 = vst [vmem:[#allocation4 + $0x8] sm:$0xff] %v1361_v19 }
  0x18   :  { %1390 = vmatprep.subr.mxu0 %v110_v9 }
  0x19   :  { %1391 = vmatpush3.msra.mxu0 %v94_v10 }
  0x1a   :  { %1392 = vmatprep.subr.mxu0 %v109_v11 }
  0x1b   :  { %1393 = vmatpush3.msra.mxu0 %v93_v12 }
  0x1c   :  { %1394 = vmatprep.subr.mxu0 %v108_v13 }
  0x1d   :  { %30 = vsyncpa [#allocation5], 0  ;;  %1395 = vmatpush3.msra.mxu0 %v92_v15  ;;  %v106_v22 = vld [vmem:[%s2389_s24 + $0xb8] sm:$0xff]  ;;  %1485 = vmatpush3.msra.mxu1 %v207_v17  ;;  %v205_v24 = vld [vmem:[%s2391_s26 + $0x60] sm:$0xff]  ;;  %vm1705_vm1 = vmmov 0   ;;  %s2392_s3 = sld [smem:[#allocation12_spill]] }
  0x1e   :  { %1396 = vmatprep.subr.mxu0 %v107_v18  ;;  %v90_v23 = vld [vmem:[%s2389_s24 + $0x38] sm:$0xff]  ;;  %1486 = vmatprep.subr.mxu1 %v1704_v4  ;;  %v105_v25 = vld [vmem:[%s2389_s24 + $0xb0] sm:$0xff]  ;;  %v104_v28 = vld [vmem:[%s2389_s24 + $0xa8] sm:$0xff]  ;;  %s2393_s30 = sld [smem:[#allocation15_spill]]  ;;  %vm302_vm2 = vcmask 523264   ;;  %s1706_s27 = smov 96  }
  0x1f   :  { %1397 = vmatpush3.msra.mxu0 %v91_v20  ;;  %1487 = vmatpush3.msra.mxu1 %v206_v21  ;;  %v89_v26 = vld [vmem:[%s2389_s24 + $0x30] sm:$0xff]  ;;  %v204_v27 = vld [vmem:[%s2391_s26 + $0x58] sm:$0xff]  ;;  %v88_v29 = vld [vmem:[%s2389_s24 + $0x28] sm:$0xff]  ;;  %s2394_s1 = sld [smem:[#allocation14_spill]]  ;;  %vm403_vm3 = vcmask 261120   ;;  %vm487_vm4 = vcmask 130048  }
  0x20   :  { %1398 = vmatprep.subr.mxu0 %v106_v22  ;;  %1488 = vmatprep.subr.mxu1 %v1704_v4  ;;  %v103_v30 = vld [vmem:[%s2389_s24 + $0xa0] sm:$0xff]  ;;  %v102_v32 = vld [vmem:[%s2389_s24 + $0x98] sm:$0xff]  ;;  %v101_v34 = vld [vmem:[%s2389_s24 + $0x90] sm:$0xff]  ;;  %s2395_s28 = sld [smem:[#allocation9_spill]] }
  0x21   :  { %1399 = vmatpush3.msra.mxu0 %v90_v23  ;;  %1489 = vmatpush3.msra.mxu1 %v205_v24  ;;  %v87_v31 = vld [vmem:[%s2389_s24 + $0x20] sm:$0xff]  ;;  %v86_v33 = vld [vmem:[%s2389_s24 + $0x18] sm:$0xff]  ;;  %v85_v35 = vld [vmem:[%s2389_s24 + $0x10] sm:$0xff]  ;;  %s2396_s29 = sld [smem:[#allocation10_spill]] }
  0x22   :  { %1400 = vmatprep.subr.mxu0 %v105_v25  ;;  %1490 = vmatprep.subr.mxu1 %v1704_v4  ;;  %v100_v36 = vld [vmem:[%s2389_s24 + $0x88] sm:$0xff]  ;;  %v99_v38 = vld [vmem:[%s2389_s24 + $0x80] sm:$0xff]  ;;  %v203_v41 = vld [vmem:[%s2391_s26 + $0x50] sm:$0xff] }
  0x23   :  { %1401 = vmatpush3.msra.mxu0 %v89_v26  ;;  %1491 = vmatpush3.msra.mxu1 %v204_v27  ;;  %v84_v37 = vld [vmem:[%s2389_s24 + $0x8] sm:$0xff]  ;;  %v83_v39 = vld [vmem:[%s2389_s24] sm:$0xff]  ;;  %v200_v44 = vld [vmem:[%s2391_s26 + $0x38] sm:$0xff] }
  0x24   :  { %1402 = vmatprep.subr.mxu0 %v104_v28  ;;  %1492 = vmatprep.subr.mxu1 %v1704_v4  ;;  %v1956_v40 = vld [vmem:[%s2390_s4] sm:$0xff]  ;;  %v202_v42 = vld [vmem:[%s2391_s26 + $0x48] sm:$0xff]  ;;  %v199_v45 = vld [vmem:[%s2391_s26 + $0x30] sm:$0xff] }
  0x25   :  { %1403 = vmatpush3.msra.mxu0 %v88_v29  ;;  %1493 = vmatpush3.msra.mxu1 %v203_v41  ;;  %v201_v43 = vld [vmem:[%s2391_s26 + $0x40] sm:$0xff]  ;;  %v198_v46 = vld [vmem:[%s2391_s26 + $0x28] sm:$0xff]  ;;  %v196_v48 = vld [vmem:[%s2391_s26 + $0x18] sm:$0xff]  ;;  %vm75_vm13 = vcmp.gt.f32.partialorder %v1956_v40, 0.0 }
  0x26   :  { %1404 = vmatprep.subr.mxu0 %v103_v30  ;;  %1494 = vmatprep.subr.mxu1 %v1704_v4  ;;  %v197_v47 = vld [vmem:[%s2391_s26 + $0x20] sm:$0xff]  ;;  %v195_v49 = vld [vmem:[%s2391_s26 + $0x10] sm:$0xff]  ;;  %v194_v50 = vld [vmem:[%s2391_s26 + $0x8] sm:$0xff] }
  0x27   :  { %1405 = vmatpush3.msra.mxu0 %v87_v31  ;;  %1495 = vmatpush3.msra.mxu1 %v202_v42  ;;  %v193_v51 = vld [vmem:[%s2391_s26] sm:$0xff]  ;;  %v294_v58 = vld [vmem:[%s2393_s30 + $0x38] sm:$0xff]  ;;  %v293_v59 = vld [vmem:[%s2393_s30 + $0x30] sm:$0xff]  ;;  %s1709_s26 = smov 32  }
  0x28   :  { %1406 = vmatprep.subr.mxu0 %v102_v32  ;;  %1496 = vmatprep.subr.mxu1 %v1704_v4  ;;  %v1362_v53 = vld [vmem:[%s2392_s3] ss:$0 sm:$0xff]  ;;  %v292_v60 = vld [vmem:[%s2393_s30 + $0x28] sm:$0xff]  ;;  %v290_v62 = vld [vmem:[%s2393_s30 + $0x18] sm:$0xff]  ;;  %s1708_s3 = smov 80  }
  0x29   :  { %1407 = vmatpush3.msra.mxu0 %v86_v33  ;;  %1497 = vmatpush3.msra.mxu1 %v201_v43  ;;  %v291_v61 = vld [vmem:[%s2393_s30 + $0x20] sm:$0xff]  ;;  %v289_v63 = vld [vmem:[%s2393_s30 + $0x10] sm:$0xff]  ;;  %v288_v0 = vld [vmem:[%s2393_s30 + $0x8] sm:$0xff] }
  0x2a   :  { %1408 = vmatprep.subr.mxu0 %v101_v34  ;;  %1498 = vmatprep.subr.mxu1 %v1704_v4  ;;  %v287_v1 = vld [vmem:[%s2393_s30] sm:$0xff]  ;;  %v673_v8 = vld [vmem:[%s2368_s15 + $0x38] sm:$0xff]  ;;  %v672_v9 = vld [vmem:[%s2368_s15 + $0x30] sm:$0xff] }
  0x2b   :  { %1409 = vmatpush3.msra.mxu0 %v85_v35  ;;  %1499 = vmatpush3.msra.mxu1 %v200_v44  ;;  %v1363_v2 = vld [vmem:[%s2394_s1] ss:$0 sm:$0xff]  ;;  %v671_v10 = vld [vmem:[%s2368_s15 + $0x28] sm:$0xff]  ;;  %v395_v11 = vld [vmem:[%s2364_s11 + $0x18] sm:$0xff] }
  0x2c   :  { %1410 = vmatprep.subr.mxu0 %v100_v36  ;;  %1500 = vmatprep.subr.mxu1 %v1704_v4  ;;  %v394_v12 = vld [vmem:[%s2364_s11 + $0x10] sm:$0xff]  ;;  %v670_v13 = vld [vmem:[%s2368_s15 + $0x20] sm:$0xff]  ;;  %v669_v14 = vld [vmem:[%s2368_s15 + $0x18] sm:$0xff] }
  0x2d   :  { %1411 = vmatpush3.msra.mxu0 %v84_v37  ;;  %1501 = vmatpush3.msra.mxu1 %v199_v45  ;;  %v668_v15 = vld [vmem:[%s2368_s15 + $0x10] sm:$0xff]  ;;  %v667_v16 = vld [vmem:[%s2368_s15 + $0x8] sm:$0xff]  ;;  %v666_v17 = vld [vmem:[%s2368_s15] sm:$0xff] }
  0x2e   :  { %1412 = vmatprep.subr.mxu0 %v99_v38  ;;  %1514 = vmatprep.mubr.msk.f32.mxu1 %vm1705_vm1, %v1704_v4  ;;  %v665_v18 = vld [vmem:[%s2395_s28] sm:$0xff]  ;;  %v952_v19 = vld [vmem:[%s2362_s9 + $0x58] sm:$0xff]  ;;  %v393_v27 = vld [vmem:[%s2364_s11 + $0x8] sm:$0xff] }
  0x2f   :  { %1413 = vmatpush3.msra.mxu0 %v83_v39  ;;  %1502 = vmatprep.subr.mxu1 %v1704_v4  ;;  %v949_v20 = vld [vmem:[%s2362_s9 + $0x40] sm:$0xff]  ;;  %v946_v28 = vld [vmem:[%s2362_s9 + $0x28] sm:$0xff]  ;;  %v943_v30 = vld [vmem:[%s2362_s9 + $0x10] sm:$0xff] }
  0x30   :  { %187 = vmatmul.mubr.f32.vlgmr.msra.gmra.mxu0 %v1956_v40  ;;  %1517 = vmatprep.subr.mxu0 %v1704_v4  ;;  %v1364_v21 = vld [vmem:[%s2361_s8] ss:$0 sm:$0xff]  ;;  %v479_v38 = vld [vmem:[%s2366_s13 + $0x8] sm:$0xff] }
  0x31   :  { %1533 = vmatprep.mubr.msk.f32.mxu0 %vm1705_vm1, %v1704_v4  ;;  %1503 = vmatpush3.msra.mxu1 %v198_v46  ;;  %v392_v29 = vld [vmem:[%s2364_s11] sm:$0xff] }
  0x32   :  { %1504 = vmatprep.subr.mxu1 %v1704_v4  ;;  %1518 = vmatpush3.msra.mxu0 %v294_v58  ;;  %v376_v34 = vld [vmem:[%s2396_s29] sm:$0xff]  ;;  %v2170_v58 = vld [vmem:[%s2372_s19 + $0x8] sm:$0xff] }
  0x33   :  { %1505 = vmatpush3.msra.mxu1 %v197_v47  ;;  %1519 = vmatprep.subr.mxu0 %v1704_v4  ;;  %v478_v39 = vld [vmem:[%s2366_s13] sm:$0xff] }
  0x34   :  { %1506 = vmatprep.subr.mxu1 %v1704_v4  ;;  %1520 = vmatpush3.msra.mxu0 %v293_v59  ;;  %v1366_v41 = vld [vmem:[%s2365_s12] ss:$0 sm:$0xff] }
  0x35   :  { %1507 = vmatpush3.msra.mxu1 %v196_v48  ;;  %1521 = vmatprep.subr.mxu0 %v1704_v4  ;;  %v1368_v48 = vld [vmem:[%s2367_s14] ss:$0 sm:$0xff] }
  0x36   :  { %1508 = vmatprep.subr.mxu1 %v1704_v4  ;;  %1522 = vmatpush3.msra.mxu0 %v292_v60  ;;  %v2175_v59 = vld [vmem:[%s2372_s19] sm:$0xff] }
  0x37   :  { %1509 = vmatpush3.msra.mxu1 %v195_v49  ;;  %1523 = vmatprep.subr.mxu0 %v1704_v4 }
  0x38   :  { %1510 = vmatprep.subr.mxu1 %v1704_v4  ;;  %1524 = vmatpush3.msra.mxu0 %v291_v61  ;;  %v1371_v61 = vld [vmem:[%s2369_s16] ss:$0 sm:$0xff] }
  0x39   :  { %1511 = vmatpush3.msra.mxu1 %v194_v50  ;;  %1525 = vmatprep.subr.mxu0 %v1704_v4 }
  0x3a   :  { %1512 = vmatprep.subr.mxu1 %v1704_v4  ;;  %1526 = vmatpush3.msra.mxu0 %v290_v62 }
  0x3b   :  { %1513 = vmatpush3.msra.mxu1 %v193_v51  ;;  %1527 = vmatprep.subr.mxu0 %v1704_v4 }
  0x3c   :  { %1536 = vmatprep.subr.mxu1 %v1704_v4  ;;  %1528 = vmatpush3.msra.mxu0 %v289_v63 }
  0x3d   :  { %1529 = vmatprep.subr.mxu0 %v1704_v4 }
  0x3e   :  { %1530 = vmatpush3.msra.mxu0 %v288_v0 }
  0x3f   :  { %1531 = vmatprep.subr.mxu0 %v1704_v4 }
  0x40   :  { %1532 = vmatpush3.msra.mxu0 %v287_v1  ;;  %v758_v1 = vld [vmem:[%s2370_s17 + $0x18] sm:$0xff] }
  0x41   :  { %1561 = vmatprep.subr.mxu0 %v1704_v4 }
  0xf0   :  { %v1414_v52 = vpop.f32.mrf.mxu0 }
  0xf2   :  { %v1415_v54 = vpop.f32.mrf.mxu0 }
  0xf3   :  { %v1416_v55 = vadd.f32 %v1415_v54, %v1414_v52 }
  0xf5   :  { %v189_v56 = vadd.f32 %v1416_v55, %v1362_v53 }
  0xf7   :  { %1628 = vtanh.f32 %v189_v56 }
 0x104   :  { %v1629_v57 = vpop.eup %1628 }
 0x105   :  { %1515 = vmatmul.mubr.f32.vlgmr.msra.gmra.mxu1 %v1629_v57 }
 0x106   :  { %1544 = vmatprep.mubr.msk.f32.mxu1 %vm1705_vm1, %v1704_v4  ;;  %1537 = vmatpush3.msra.mxu1 %v395_v11 }
 0x107   :  { %1538 = vmatprep.subr.mxu1 %v1704_v4 }
 0x108   :  { %1539 = vmatpush3.msra.mxu1 %v394_v12 }
 0x109   :  { %1540 = vmatprep.subr.mxu1 %v1704_v4 }
 0x10a   :  { %1541 = vmatpush3.msra.mxu1 %v393_v27 }
 0x10b   :  { %1542 = vmatprep.subr.mxu1 %v1704_v4 }
 0x10c   :  { %1543 = vmatpush3.msra.mxu1 %v392_v29 }
 0x10d   :  { %1547 = vmatprep.subr.mxu1 %v1704_v4 }
 0x1c5   :  { %v282_v3 = vpop.f32.mrf.mxu1 }
 0x1c6   :  { %v283_v5 = vadd.f32 %v1363_v2, %v282_v3  ;;  %v757_v2 = vld [vmem:[%s2370_s17 + $0x10] sm:$0xff]  ;;  %v756_v3 = vld [vmem:[%s2370_s17 + $0x8] sm:$0xff] }
 0x1c7   :  { %v1516_v6 = vpop.f32.mrf.mxu1 }
 0x1c8   :  { %1630 = vtanh.f32 %v283_v5  ;;  %v755_v5 = vld [vmem:[%s2370_s17] sm:$0xff] }
 0x1d5   :  { %v1631_v7 = vpop.eup %1630 }
 0x1d6   :  { %1534 = vmatmul.mubr.msk.f32.vlgmr.msra.gmra.mxu0 %vm302_vm2, %v1631_v7 }
 0x1d7   :  { %1577 = vmatprep.mubr.msk.f32.mxu0 %vm1705_vm1, %v1704_v4  ;;  %1562 = vmatpush3.msra.mxu0 %v673_v8 }
 0x1d8   :  { %1563 = vmatprep.subr.mxu0 %v1704_v4 }
 0x1d9   :  { %1564 = vmatpush3.msra.mxu0 %v672_v9  ;;  %v1373_v9 = vld [vmem:[%s2371_s18] ss:$0 sm:$0xff]  ;;  %s1710_s18 = smov [#allocation4]  }
 0x1da   :  { %1565 = vmatprep.subr.mxu0 %v1704_v4  ;;  %s1346_s0 = sshll.u32 %s1710_s18, 4  ;;  %s1347_s0 = int_to_ptr.vmem [resolvable:$true] %s1346_s0 }
 0x1db   :  { %1566 = vmatpush3.msra.mxu0 %v671_v10  ;;  %s1660_s15 = scalar_lea.vmem %s1347_s0, 256  ;;  %p1665_p1 = scmp.lt.s32.totalorder %s1347_s0, %s1347_s0 }
 0x1dc   :  { %1567 = vmatprep.subr.mxu0 %v1704_v4  ;;  %p1661_p0 = scmp.ne.s32.totalorder %s1347_s0, %s1660_s15  ;;  %p1666_p2 = scmp.lt.s32.totalorder %s1660_s15, %s1660_s15 }
 0x1dd   :  { %1568 = vmatpush3.msra.mxu0 %v670_v13 }
 0x1de   :  { %1569 = vmatprep.subr.mxu0 %v1704_v4  ;;  %p1667_p3 = por %p1666_p2, %p1665_p1 }
 0x1df   :  { %1570 = vmatpush3.msra.mxu0 %v669_v14 }
 0x1e0   :  { %1571 = vmatprep.subr.mxu0 %v1704_v4  ;;  %p1668_p4 = pnand %p1667_p3, %p1661_p0 }
 0x1e1   :  { %1572 = vmatpush3.msra.mxu0 %v668_v15 }
 0x1e2   :  { %1573 = vmatprep.subr.mxu0 %v1704_v4 }
 0x1e3   :  { %1574 = vmatpush3.msra.mxu0 %v667_v16 }
 0x1e4   :  { %1575 = vmatprep.subr.mxu0 %v1704_v4 }
 0x1e5   :  { %1576 = vmatpush3.msra.mxu0 %v666_v17 }
 0x1e6   :  { %1598 = vmatprep.subr.mxu0 %v1704_v4  ;;  %1578 = vmatmul.mubr.msk.f32.vlgmr.msra.gmra.mxu0 %vm302_vm2, %v665_v18 }
 0x1e7   :  { %1599 = vmatpush3.msra.mxu0 %v952_v19  ;;  %1606 = vmatprep.mubr.msk.f32.mxu0 %vm1705_vm1, %v1704_v4  ;;  %v951_v19 = vld [vmem:[%s2362_s9 + $0x50] sm:$0xff] }
 0x1e8   :  { %1600 = vmatprep.subr.mxu0 %v1704_v4 }
 0x1e9   :  { %1601 = vmatpush3.msra.mxu0 %v949_v20  ;;  %v645_v20 = vlaneseq }
 0x1ea   :  { %1602 = vmatprep.subr.mxu0 %v1704_v4 }
 0x1eb   :  { %1603 = vmatpush3.msra.mxu0 %v946_v28 }
 0x1ec   :  { %1604 = vmatprep.subr.mxu0 %v1704_v4 }
 0x1ed   :  { %1605 = vmatpush3.msra.mxu0 %v943_v30 }
 0x296   :  { %v372_v22 = vpop.f32.mrf.mxu0 }
 0x297   :  { %v2108_v23 = vadd.f32 %v1364_v21, %v372_v22  ;;  %v2225_v21 = vand.u32 127, %v645_v20 }
 0x298   :  { %v1535_v24 = vpop.f32.mrf.mxu0 }
 0x299   :  { %v377_v25 = vmul.f32 0.5, %v2108_v23 }
 0x29b   :  { %v378_v26 = vmul.f32 1.442695, %v377_v25  ;;  %v388_v25 = vld [vmem:[%s2373_s20] sm:$0xff] }
 0x29c   :  { %v1144_v28 = vmul.f32 %v388_v25, %v388_v25 }
 0x29d   :  { %1632 = vpow2.f32 %v378_v26 }
 0x2a6   :  { %v750_v32 = vpop.f32.mrf.mxu0 }
 0x2a7   :  { %v751_v62 = vadd.f32 %v1371_v61, %v750_v32  ;;  %v390_v32 = vld [vmem:[%s2373_s20 + $0x10] sm:$0xff]  ;;  %v944_v61 = vld [vmem:[%s2362_s9 + $0x18] sm:$0xff] }
 0x2a8   :  { %v1579_v33 = vpop.f32.mrf.mxu0 }
 0x2aa   :  { %v1633_v31 = vpop.eup %1632 }
 0x2ab   :  { %381 = vrot.lane.b32.xlu0 %v1633_v31, %s1706_s27 }
 0x31d   :  { %v382_v35 = vpop.permute.xlu0 %381 }
 0x31e   :  { %v384_v36 = vmul.f32 %v382_v35, %v376_v34  ;;  %v1146_v34 = vmul.f32 %v390_v32, %v390_v32 }
 0x320   :  { %v2131_v37 = vadd.f32 %v384_v36, %v2108_v23  ;;  %v1148_v36 = vsel %vm487_vm4, %v1144_v28, 0.0 }
 0x322   :  { %1545 = vmatmul.mubr.msk.f32.vlgmr.msra.gmra.mxu1 %vm403_vm3, %v2131_v37  ;;  %1607 = vmatmul.mubr.msk.f32.vlgmr.msra.gmra.mxu0 %vm403_vm3, %v2131_v37  ;;  %v1140_v30 = vmul.f32 %v2131_v37, %v2131_v37 }
 0x323   :  { %1551 = vmatprep.mubr.msk.f32.mxu1 %vm1705_vm1, %v1704_v4  ;;  %1548 = vmatpush3.msra.mxu1 %v479_v38  ;;  %v391_v38 = vld [vmem:[%s2373_s20 + $0x18] sm:$0xff] }
 0x324   :  { %1549 = vmatprep.subr.mxu1 %v1704_v4 }
 0x325   :  { %1550 = vmatpush3.msra.mxu1 %v478_v39 }
 0x326   :  { %1554 = vmatprep.subr.mxu1 %v1704_v4 }
 0x3e2   :  { %v473_v42 = vpop.f32.mrf.mxu1  ;;  %v2150_v43 = vpop.f32.mrf.mxu0 }
 0x3e3   :  { %v474_v44 = vadd.f32 %v1366_v41, %v473_v42  ;;  %v1147_v42 = vmul.f32 %v391_v38, %v391_v38 }
 0x3e4   :  { %v1546_v45 = vpop.f32.mrf.mxu1  ;;  %v1608_v46 = vpop.f32.mrf.mxu0 }
 0x3e5   :  { %1634 = vtanh.f32 %v474_v44  ;;  %v1151_v44 = vsel %vm487_vm4, %v1146_v34, 0.0  ;;  %v1141_v45 = vsel %vm403_vm3, %v1140_v30, 0.0 }
 0x3f2   :  { %v1635_v47 = vpop.eup %1634 }
 0x3f3   :  { %1552 = vmatmul.mubr.msk.f32.vlgmr.msra.gmra.mxu1 %vm487_vm4, %v1635_v47 }
 0x3f4   :  { %1558 = vmatprep.mubr.msk.f32.mxu1 %vm1705_vm1, %v1704_v4  ;;  %1555 = vmatpush3.msra.mxu1 %v2170_v58 }
 0x3f5   :  { %1556 = vmatprep.subr.mxu1 %v1704_v4 }
 0x3f6   :  { %1557 = vmatpush3.msra.mxu1 %v2175_v59 }
 0x3f7   :  { %1580 = vmatprep.subr.mxu1 %v1704_v4 }
 0x4b3   :  { %v557_v49 = vpop.f32.mrf.mxu1 }
 0x4b4   :  { %v2158_v50 = vadd.f32 %v1368_v48, %v557_v49  ;;  %v1153_v48 = vsel %vm487_vm4, %v1147_v42, 0.0 }
 0x4b5   :  { %v1553_v51 = vpop.f32.mrf.mxu1 }
 0x4b6   :  { %v561_v52 = vsel %vm487_vm4, %v2158_v50, -inf }
 0x4b7   :  { %562 = vmax.xlane.f32.xlu0 %v561_v52 }
 0x540   :  { %v2162_v53 = vpop.xlane.xlu0 %562 }
 0x541   :  { %v564_v54 = vsub.f32 %v2158_v50, %v2162_v53  ;;  %vm647_vm5 = vcmp.ge.f32.partialorder %v2158_v50, %v2162_v53 }
 0x542   :  { %v648_v24 = vsel %vm647_vm5, %v2225_v21, 16 }
 0x543   :  { %v565_v55 = vmul.f32 1.442695, %v564_v54  ;;  %v649_v31 = vsel %vm487_vm4, %v648_v24, 2147483647  ;;  %v950_v54 = vld [vmem:[%s2362_s9 + $0x48] sm:$0xff] }
 0x544   :  { %v651_v41 = vshra.s32 %v649_v31, 16 }
 0x545   :  { %1636 = vpow2.f32 %v565_v55  ;;  %v948_v55 = vld [vmem:[%s2362_s9 + $0x38] sm:$0xff] }
 0x546   :  { %v653_v50 = vcvt.s32.f32 %v651_v41 }
 0x552   :  { %v1637_v56 = vpop.eup %1636 }
 0x553   :  { %v567_v57 = vsel %vm487_vm4, %v1637_v56, 0.0 }
 0x554   :  { %568 = vadd.xlane.f32.xlu1 %v567_v57  ;;  %v947_v57 = vld [vmem:[%s2362_s9 + $0x30] sm:$0xff] }
 0x5dd   :  { %v569_v60 = vpop.xlane.xlu1 %568 }
 0x5de   :  { %1638 = vrcp.f32 %v569_v60  ;;  %v945_v60 = vld [vmem:[%s2362_s9 + $0x20] sm:$0xff] }
 0x5df   :  { %1640 = vtanh.f32 %v751_v62  ;;  %v942_v62 = vld [vmem:[%s2362_s9 + $0x8] sm:$0xff] }
 0x5eb   :  { %v1639_v63 = vpop.eup %1638 }
 0x5ec   :  { %v2184_v0 = vmul.f32 %v1639_v63, %v1637_v56  ;;  %v1641_v6 = vpop.eup %1640  ;;  %v941_v63 = vld [vmem:[%s2362_s9] sm:$0xff] }
 0x5ee   :  { %1559 = vmatmul.mubr.msk.f32.vlgmr.msra.gmra.mxu1 %vm487_vm4, %v2184_v0 }
 0x5ef   :  { %1581 = vmatpush3.msra.mxu1 %v758_v1  ;;  %1588 = vmatprep.mubr.msk.f32.mxu1 %vm1705_vm1, %v1704_v4 }
 0x5f0   :  { %1582 = vmatprep.subr.mxu1 %v1704_v4 }
 0x5f1   :  { %1583 = vmatpush3.msra.mxu1 %v757_v2 }
 0x5f2   :  { %1584 = vmatprep.subr.mxu1 %v1704_v4 }
 0x5f3   :  { %1585 = vmatpush3.msra.mxu1 %v756_v3  ;;  %v650_v3 = vand.u32 65535, %v649_v31 }
 0x5f4   :  { %1586 = vmatprep.subr.mxu1 %v1704_v4 }
 0x5f5   :  { %1587 = vmatpush3.msra.mxu1 %v755_v5  ;;  %v1162_v5 = vmul.f32 2.0, %v2150_v43  ;;  %v1097_v43 = vshrl.u32 %v645_v20, 7 }
 0x5f6   :  { %1589 = vmatmul.mubr.msk.f32.vlgmr.msra.gmra.mxu1 %vm403_vm3, %v1641_v6  ;;  %1591 = vmatprep.subr.mxu1 %v1704_v4 }
 0x5f7   :  { %1592 = vmatpush3.msra.mxu1 %v2170_v58  ;;  %1595 = vmatprep.mubr.msk.f32.mxu1 %vm1705_vm1, %v1704_v4  ;;  %vm1254_vm11 = vcmp.ne.s32.totalorder %v1097_v43, %v2225_v21 }
 0x5f8   :  { %1593 = vmatprep.subr.mxu1 %v1704_v4 }
 0x5f9   :  { %1594 = vmatpush3.msra.mxu1 %v2175_v59 }
 0x5fa   :  { %977 = vmatprep.subr.mxu1 %v951_v19  ;;  %v1094_v19 = vld [vmem:[%s2363_s10] sm:$0x3]  ;;  %s1707_s10 = smov 48  }
 0x6ae   :  { %v2212_v7 = vpop.f32.mrf.mxu1 }
 0x6b0   :  { %v1560_v8 = vpop.f32.mrf.mxu1 }
 0x6b6   :  { %v835_v10 = vpop.f32.mrf.mxu1 }
 0x6b7   :  { %v836_v11 = vadd.f32 %v1373_v9, %v835_v10 }
 0x6b8   :  { %v1590_v12 = vpop.f32.mrf.mxu1 }
 0x6b9   :  { %v839_v13 = vsel %vm487_vm4, %v836_v11, -inf }
 0x6ba   :  { %840 = vmax.xlane.f32.xlu1 %v839_v13 }
 0x743   :  { %v841_v14 = vpop.xlane.xlu1 %840 }
 0x744   :  { %v842_v15 = vsub.f32 %v836_v11, %v841_v14  ;;  %vm923_vm6 = vcmp.ge.f32.partialorder %v836_v11, %v841_v14 }
 0x745   :  { %v924_v33 = vsel %vm923_vm6, %v2225_v21, 16 }
 0x746   :  { %v843_v16 = vmul.f32 1.442695, %v842_v15  ;;  %v2252_v46 = vsel %vm487_vm4, %v924_v33, 2147483647 }
 0x747   :  { %v927_v51 = vshra.s32 %v2252_v46, 16  ;;  %v926_v33 = vand.u32 65535, %v2252_v46  ;;  %v1380_v46 = vsel %vm1254_vm11, 1.0, %v1704_v4 }
 0x748   :  { %1642 = vpow2.f32 %v843_v16 }
 0x749   :  { %v2264_v56 = vcvt.s32.f32 %v927_v51 }
 0x755   :  { %v1643_v17 = vpop.eup %1642 }
 0x756   :  { %v845_v18 = vsel %vm487_vm4, %v1643_v17, 0.0 }
 0x757   :  { %846 = vadd.xlane.f32.xlu1 %v845_v18 }
 0x768   :  { %1134 = vrot.lane.b32.xlu1 %v2108_v23, %s1706_s27  ;;  %v389_v23 = vld [vmem:[%s2373_s20 + $0x8] sm:$0xff] }
 0x769   :  { %v1145_v27 = vmul.f32 %v389_v23, %v389_v23 }
 0x76b   :  { %v1149_v35 = vsel %vm487_vm4, %v1145_v27, 0.0 }
 0x76c   :  { %v1150_v39 = vadd.f32 %v1149_v35, %v1148_v36 }
 0x76e   :  { %v1152_v47 = vadd.f32 %v1151_v44, %v1150_v39 }
 0x770   :  { %v1154_v49 = vadd.f32 %v1153_v48, %v1152_v47 }
 0x772   :  { %v1155_v11 = vrot.slane %v1154_v49, 4 }
 0x774   :  { %v1156_v12 = vadd.f32 %v1155_v11, %v1154_v49 }
 0x776   :  { %v1157_v13 = vrot.slane %v1156_v12, 2 }
 0x778   :  { %v1158_v14 = vadd.f32 %v1157_v13, %v1156_v12 }
 0x7e0   :  { %v847_v22 = vpop.xlane.xlu1 %846 }
 0x7e1   :  { %1644 = vrcp.f32 %v847_v22  ;;  %v1102_v22 = vsub.s32 1, %v1097_v43 }
 0x7e4   :  { %v1135_v26 = vpop.permute.xlu1 %1134 }
 0x7e5   :  { %v1137_v29 = vsel %vm403_vm3, %v1135_v26, 0.0 }
 0x7e6   :  { %1138 = vadd.xlane.f32.xlu0 %v1137_v29 }
 0x7ea   :  { %1142 = vadd.xlane.f32.xlu0 %v1141_v45 }
 0x7ee   :  { %v1645_v52 = vpop.eup %1644  ;;  %654 = vmin.xlane.f32.xlu0 %v653_v50 }
 0x7ef   :  { %v2256_v53 = vmul.f32 %v1645_v52, %v1643_v17  ;;  %v1098_v17 = vsub.s32 0, %v1097_v43 }
 0x7f1   :  { %1596 = vmatmul.mubr.msk.f32.vlgmr.msra.gmra.mxu1 %vm487_vm4, %v2256_v53  ;;  %v1099_v24 = vrot.slane %v1094_v19, %v1098_v17 }
 0x7f2   :  { %978 = vmatpush1.msra.mxu1 %v950_v54  ;;  %930 = vmin.xlane.f32.xlu0 %v2264_v56 }
 0x7f3   :  { %979 = vmatprep.subr.mxu1 %v948_v55  ;;  %1017 = vmatprep.mubr.f32.mxu1 %v1704_v4 }
 0x7f4   :  { %980 = vmatpush1.msra.mxu1 %v947_v57 }
 0x7f5   :  { %981 = vmatprep.subr.mxu1 %v945_v60 }
 0x7f6   :  { %982 = vmatpush1.msra.mxu1 %v944_v61 }
 0x7f7   :  { %983 = vmatprep.subr.mxu1 %v942_v62 }
 0x7f8   :  { %984 = vmatpush1.msra.mxu1 %v941_v63 }
 0x7f9   :  { %1376 = vmatmul.mubr.msk.f32.vlgmr.msra.gmra.mxu1 %vm403_vm3, %v2131_v37  ;;  %1609 = vmatprep.subr.mxu1 %v391_v38 }
 0x7fa   :  { %1610 = vmatpush3.msra.mxu1 %v391_v38  ;;  %1617 = vmatprep.mubr.msk.f32.mxu1 %vm403_vm3, %v2175_v59  ;;  %v652_v59 = vcvt.s32.f32 %v650_v3  ;;  %v928_v38 = vcvt.s32.f32 %v926_v33 }
 0x7fb   :  { %1611 = vmatprep.subr.mxu1 %v390_v32 }
 0x7fc   :  { %1612 = vmatpush3.msra.mxu1 %v390_v32 }
 0x7fd   :  { %1613 = vmatprep.subr.mxu1 %v389_v23 }
 0x7fe   :  { %1614 = vmatpush3.msra.mxu1 %v389_v23  ;;  %v1103_v23 = vrot.slane %v1094_v19, %v1102_v22 }
 0x7ff   :  { %1615 = vmatprep.subr.mxu1 %v388_v25 }
 0x800   :  { %1616 = vmatpush3.msra.mxu1 %v388_v25 }
 0x801   :  { %1618 = vmatmul.mubr.msk.f32.vlgmr.msra.gmra.mxu1 %vm403_vm3, %v2170_v58  ;;  %v1159_v58 = vrot.slane %v1158_v14, 1 }
 0x803   :  { %v2299_v15 = vadd.f32 %v1159_v58, %v1158_v14 }
 0x805   :  { %1646 = vrsqrt.f32 %v2299_v15  ;;  %vm1286_vm8 = vcmp.eq.f32.partialorder %v2299_v15, inf  ;;  %v1289_v35 = vand.u32 2147483648, %v2299_v15  ;;  %vm1288_vm9 = vcmp.eq.f32.partialorder %v2299_v15, 0.0 }
 0x812   :  { %v1647_v26 = vpop.eup %1646 }
 0x813   :  { %v1285_v30 = vmul.f32 %v1647_v26, %v2299_v15 }
 0x815   :  { %v1287_v36 = vsel %vm1286_vm8, %v2299_v15, %v1285_v30 }
 0x816   :  { %v1290_v39 = vsel %vm1288_vm9, %v1289_v35, %v1287_v36 }
 0x817   :  { %v1291_v42 = vsel %vm487_vm4, %v1290_v39, 0.0 }
 0x86f   :  { %v1139_v1 = vpop.xlane.xlu0 %1138 }
 0x873   :  { %v1143_v2 = vpop.xlane.xlu0 %1142 }
 0x874   :  { %v1161_v6 = vsub.f32 %v1139_v1, %v1143_v2 }
 0x876   :  { %v2292_v8 = vadd.f32 %v1162_v5, %v1161_v6  ;;  %v1360_v5 = vsel %vm75_vm13, 1.0, %v1704_v4 }
 0x877   :  { %v2294_v9 = vpop.xlane.xlu0 %654  ;;  %81 = vst [vmem:[#allocation4] sm:$0xff] %v1360_v5 }
 0x878   :  { %vm656_vm7 = vcmp.eq.f32.partialorder %v653_v50, %v2294_v9 }
 0x879   :  { %v2297_v10 = vsel %vm656_vm7, %v652_v59, inf }
 0x87b   :  { %v2310_v32 = vpop.xlane.xlu0 %930 }
 0x87c   :  { %vm932_vm10 = vcmp.eq.f32.partialorder %v2264_v56, %v2310_v32  ;;  %v1253_v56 = vadd.s32 8, %v1097_v43 }
 0x87d   :  { %v933_v41 = vsel %vm932_vm10, %v928_v38, inf }
 0x87e   :  { %vm1255_vm12 = vcmp.ne.s32.totalorder %v1253_v56, %v2225_v21 }
 0x87f   :  { %v1381_v57 = vsel %vm1255_vm12, 1.0, %v1704_v4 }
 0x8b1   :  { %v2303_v16 = vpop.f32.mrf.mxu1 }
 0x8b3   :  { %v1597_v18 = vpop.f32.mrf.mxu1 }
 0x8b9   :  { %v1019_v25 = vpop.f32.mrf.mxu1 }
 0x8ba   :  { %v1106_v27 = vadd.f32 %v1099_v24, %v1019_v25 }
 0x8bb   :  { %v1021_v28 = vpop.f32.mrf.mxu1 }
 0x8bc   :  { %v1107_v29 = vadd.f32 %v1103_v23, %v1021_v28  ;;  %v1108_v31 = vsub.f32 0.0, %v1106_v27 }
 0x8be   :  { %v1109_v20 = vsub.f32 0.0, %v1107_v29 }
 0x8c0   :  { %v1110_v34 = vmax.f32 %v1108_v31, %v1109_v20 }
 0x8c1   :  { %v1619_v44 = vpop.f32.mrf.mxu1 }
 0x8c2   :  { %1111 = vmax.xlane.f32.xlu1 %v1110_v34  ;;  %v1261_v60 = vmul.f32 %v1619_v44, %v1381_v57 }
 0x8c3   :  { %v1242_v45 = vpop.f32.mrf.mxu1 }
 0x8c4   :  { %v1260_v47 = vmul.f32 %v1380_v46, %v1242_v45  ;;  %v1263_v63 = vmul.f32 %v1261_v60, %v1261_v60 }
 0x8c6   :  { %934 = vmin.xlane.f32.xlu1 %v933_v41  ;;  %v1262_v48 = vmul.f32 %v1260_v47, %v1260_v47  ;;  %v1267_v1 = vsel %vm487_vm4, %v1263_v63, 0.0 }
 0x8c8   :  { %v1264_v49 = vsel %vm487_vm4, %v1262_v48, 0.0 }
 0x8c9   :  { %1265 = vadd.xlane.f32.xlu0 %v1264_v49 }
 0x8ca   :  { %1292 = vadd.xlane.f32.xlu1 %v1291_v42 }
 0x8db   :  { %1299 = vrot.lane.b32.xlu1 %v2212_v7, %s1707_s10 }
 0x8df   :  { %1302 = vrot.lane.b32.xlu1 %v2256_v53, %s1708_s3  ;;  %v1164_v53 = vsub.f32 %v2292_v8, %v2299_v15 }
 0x8e1   :  { %v1165_v2 = vmul.f32 -0.5, %v1164_v53 }
 0x8e3   :  { %v1166_v3 = vmul.f32 %v1165_v2, %v2184_v0 }
 0x8e5   :  { %v1167_v21 = vsel %vm487_vm4, %v1166_v3, 0.0 }
 0x94b   :  { %v1112_v50 = vpop.xlane.xlu1 %1111 }
 0x94c   :  { %v1113_v51 = vsub.f32 %v1108_v31, %v1112_v50  ;;  %v1114_v52 = vsub.f32 %v1109_v20, %v1112_v50 }
 0x94e   :  { %v1115_v54 = vmul.f32 1.442695, %v1113_v51  ;;  %v1117_v55 = vmul.f32 1.442695, %v1114_v52 }
 0x950   :  { %1648 = vpow2.f32 %v1115_v54 }
 0x951   :  { %1650 = vpow2.f32 %v1117_v55 }
 0x95d   :  { %v1649_v61 = vpop.eup %1648 }
 0x95e   :  { %v1651_v62 = vpop.eup %1650 }
 0x95f   :  { %v1119_v7 = vadd.f32 %v1651_v62, %v1649_v61 }
 0x961   :  { %1120 = vadd.xlane.f32.xlu0 %v1119_v7 }
 0x965   :  { %1268 = vadd.xlane.f32.xlu0 %v1267_v1 }
 0x969   :  { %658 = vmin.xlane.f32.xlu0 %v2297_v10 }
 0x96d   :  { %1168 = vadd.xlane.f32.xlu0 %v1167_v21 }
 0x983   :  { %1295 = vrot.lane.b32.xlu0 %v2184_v0, %s1709_s26 }
 0x987   :  { %1306 = vrot.lane.b32.xlu0 %v2303_v16, %s1706_s27 }
 0x988   :  { %1671 = shalt.err (!%p1668_p4)
}
 0x989   :  { %1349 = dma.vmem_to_hbm [thread:$0]  %s1347_s0, 256, %s2376_s23, [#allocation5]   ;;  %v1266_v0 = vpop.xlane.xlu0 %1265  ;;  %v935_v40 = vpop.xlane.xlu1 %934  ;;  %vm1310_vm14 = vcmask 392192   ;;  %vm1312_vm15 = vcmask 654336   ;;  %vm1314_vm0 = vcmask 785408   ;;  %v661_v27 = vcvt.f32.s32 %v2294_v9 }
 0x98a   :  { %v937_v31 = vcvt.f32.s32 %v2310_v32  ;;  %v936_v34 = vcvt.f32.s32 %v935_v40  ;;  %vm1316_vm1 = vcmask 7168   ;;  %s1711_s5 = smov [#allocation2]   ;;  %vm1318_vm2 = vcmask 15360  }
 0x98b   :  { %s1336_s12 = sshll.u32 %s1711_s5, 4  ;;  %vm1320_vm4 = vcmask 23552   ;;  %vm1322_vm6 = vcmask 31744   ;;  %vm1324_vm7 = vcmask 39936   ;;  %s1337_s12 = int_to_ptr.vmem [resolvable:$true] %s1336_s12 }
 0x98c   :  { %v938_v35 = vshll.u32 %v937_v31, 16  ;;  %s1680_s14 = scalar_lea.vmem %s1337_s12, 256  ;;  %p1685_p6 = scmp.lt.s32.totalorder %s1337_s12, %s1337_s12 }
 0x98d   :  { %v1293_v59 = vpop.xlane.xlu1 %1292  ;;  %p1681_p5 = scmp.ne.s32.totalorder %s1337_s12, %s1680_s14  ;;  %p1686_p7 = scmp.lt.s32.totalorder %s1680_s14, %s1680_s14 }
 0x98e   :  { %v939_v38 = vadd.s32 %v938_v35, %v936_v34  ;;  %v1294_v50 = vmul.f32 0.0625, %v1293_v59 }
 0x98f   :  { %p1687_p8 = por %p1686_p7, %p1685_p6 }
 0x990   :  { %v940_v39 = vcvt.s32.f32 %v939_v38 }
 0x991   :  { %v1300_v58 = vpop.permute.xlu1 %1299  ;;  %p1688_p9 = pnand %p1687_p8, %p1681_p5 }
 0x995   :  { %v1303_v28 = vpop.permute.xlu1 %1302 }
 0x9ea   :  { %v1121_v6 = vpop.xlane.xlu0 %1120 }
 0x9eb   :  { %1652 = vrcp.f32 %v1121_v6 }
 0x9ee   :  { %v1269_v4 = vpop.xlane.xlu0 %1268 }
 0x9ef   :  { %v1270_v8 = vadd.f32 %v1269_v4, %v1266_v0 }
 0x9f1   :  { %v1271_v10 = vrot.slane %v1270_v8, 4 }
 0x9f2   :  { %v659_v11 = vpop.xlane.xlu0 %658 }
 0x9f3   :  { %v1272_v12 = vadd.f32 %v1271_v10, %v1270_v8  ;;  %v660_v20 = vcvt.f32.s32 %v659_v11 }
 0x9f5   :  { %v1273_v13 = vrot.slane %v1272_v12, 2 }
 0x9f6   :  { %v1169_v14 = vpop.xlane.xlu0 %1168 }
 0x9f7   :  { %v1274_v15 = vadd.f32 %v1273_v13, %v1272_v12 }
 0x9f8   :  { %v1653_v43 = vpop.eup %1652 }
 0x9f9   :  { %v1275_v16 = vrot.slane %v1274_v15, 1  ;;  %v1123_v17 = vmul.f32 %v1653_v43, %v1649_v61  ;;  %v1124_v18 = vmul.f32 %v1653_v43, %v1651_v62 }
 0x9fa   :  { %v1296_v19 = vpop.permute.xlu0 %1295 }
 0x9fb   :  { %v1276_v22 = vadd.f32 %v1275_v16, %v1274_v15  ;;  %v1309_v24 = vsel %vm403_vm3, %v2131_v37, %v1296_v19  ;;  %v1125_v23 = vadd.f32 0.0001, %v1123_v17  ;;  %v1126_v25 = vadd.f32 0.0001, %v1124_v18 }
 0x9fc   :  { %v1311_v26 = vsel %vm1310_vm14, %v1309_v24, %v1300_v58  ;;  %v662_v37 = vshll.u32 %v661_v27, 16 }
 0x9fd   :  { %1654 = vrsqrt.f32 %v1276_v22  ;;  %v1313_v30 = vsel %vm1312_vm15, %v1311_v26, %v1303_v28  ;;  %vm1279_vm3 = vcmp.eq.f32.partialorder %v1276_v22, inf  ;;  %v1282_v46 = vand.u32 2147483648, %v1276_v22 }
 0x9fe   :  { %v1307_v29 = vpop.permute.xlu0 %1306  ;;  %1656 = vlog2.f32 %v1125_v23  ;;  %v663_v36 = vadd.s32 %v662_v37, %v660_v20  ;;  %vm1281_vm5 = vcmp.eq.f32.partialorder %v1276_v22, 0.0 }
 0x9ff   :  { %v1315_v33 = vsel %vm1314_vm0, %v1313_v30, %v1307_v29  ;;  %1658 = vlog2.f32 %v1126_v25 }
 0xa00   :  { %1326 = vst [vmem:[%s2374_s21] sm:$0xff] %v1315_v33  ;;  %v664_v9 = vcvt.s32.f32 %v663_v36 }
 0xa02   :  { %v1317_v44 = vsel %vm1316_vm1, %v664_v9, %v940_v39 }
 0xa03   :  { %v1319_v52 = vsel %vm1318_vm2, %v1317_v44, %v1169_v14 }
 0xa0a   :  { %v1655_v41 = vpop.eup %1654 }
 0xa0b   :  { %v1657_v42 = vpop.eup %1656  ;;  %v1278_v32 = vmul.f32 %v1655_v41, %v1276_v22 }
 0xa0c   :  { %v1659_v45 = vpop.eup %1658  ;;  %v1128_v47 = vmul.f32 0.6931472, %v1657_v42 }
 0xa0d   :  { %v1280_v48 = vsel %vm1279_vm3, %v1276_v22, %v1278_v32  ;;  %v1130_v49 = vmul.f32 0.6931472, %v1659_v45 }
 0xa0e   :  { %v1283_v51 = vsel %vm1281_vm5, %v1282_v46, %v1280_v48  ;;  %1131 = vst [vmem:[#allocation2] sm:$0xff] %v1128_v47 }
 0xa0f   :  { %v1321_v54 = vsel %vm1320_vm4, %v1319_v52, %v1283_v51  ;;  %1132 = vst [vmem:[#allocation2 + $0x8] sm:$0xff] %v1130_v49 }
 0xa10   :  { %v1323_v55 = vsel %vm1322_vm6, %v1321_v54, %v1294_v50 }
 0xa11   :  { %1691 = shalt.err (!%p1688_p9)
}
 0xa12   :  { %1339 = dma.vmem_to_hbm [thread:$0]  %s1337_s12, 256, %s2375_s22, [#allocation3]   ;;  %v1325_v56 = vsel %vm1324_vm7, %v1323_v55, 0.0 }
 0xa13   :  { %1327 = vst [vmem:[%s2374_s21 + $0x8] sm:$0xff] %v1325_v56 }
 0xa14   :  { %1700 = dma.done.wait [#allocation3], 256  }
 0xa15   :  { %1701 = vsyncadd [#allocation3], 4294967040 }
 0xa16   :  { %1702 = dma.done.wait [#allocation5], 256  }
 0xa17   :  { %1703 = vsyncadd [#allocation5], 4294967040 }
 0xa18   :  { %1358 = vsyncpa [#allocation3], 1 }
 0xa19   :  { %1359 = vsyncpa [#allocation5], 1 }

</bundles_post_ra>
